<compile_context>
chip_gen: v7x
topology: tpu7x:2x2x1
jax: 0.10.0
libtpu: 0.0.40
codegen_flags: <defaults>
</compile_context>

<pallas_src>
import jax
import jax.numpy as jnp
from jax.experimental import pallas as pl
from jax.experimental.pallas import tpu as pltpu


def _round_up(v, m):
    return ((v + m - 1) // m) * m


_LANE = 128
_VMEM_BUDGET = 40 * 1024 * 1024   # conservative per-step footprint (fits v7x 64 MiB)


# ------------------------------ Pallas kernel --------------------------------
def _upsample_conv_kernel(x_ref, halo_ref, w_ref, o_ref):
    # x_ref:    (TH, Wp, Cp)        bf16  one row tile of an NHWC image
    # halo_ref: (2, Wp, Cp)         bf16  clamped rows just above / below the tile
    # w_ref:    (Cp, 128)           bf16  1x1-conv weight slice (K x N), zero padded
    # o_ref:    (4, TH, Wp, TOCs)   bf16  parity-separated output:
    #                               o[2*pi+pj, i, j, :] == out[2*(row0+i)+pi, 2*j+pj, :]
    TH, Wp, Cp = x_ref.shape
    TOCs = o_ref.shape[-1]
    R = TH * Wp

    # ---- 1x1 conv == channel matmul on the MXU (tile rows + 2 halo rows) ----
    xext = jnp.concatenate([halo_ref[0:1], x_ref[...], halo_ref[1:2]], axis=0)
    yext = jnp.dot(xext.reshape((TH + 2) * Wp, Cp), w_ref[...],
                   preferred_element_type=jnp.float32)
    yext = yext[:, :TOCs]                      # drop compute-only padded lanes

    # ---- separable bilinear x2 (align_corners=False): 1D taps {0.75, 0.25} ----
    # H pass: row shifts are whole, sublane-aligned Wp-row slabs of yext.
    yc = 0.75 * yext[Wp:Wp + R]
    r0 = yc + 0.25 * yext[:R]                  # even output rows (up neighbour)
    r1 = yc + 0.25 * yext[2 * Wp:]             # odd output rows  (down neighbour)

    # W pass: +-1 column shifts on the XLU (roll), edges clamped with iota masks.
    col = jax.lax.broadcasted_iota(jnp.int32, (TH, Wp, TOCs), 1).reshape(R, TOCs)
    is_first = col == 0
    is_last = col == Wp - 1

    def blend_w(r):
        lf = jnp.where(is_first, r, pltpu.roll(r, shift=1, axis=0))       # r[j-1]
        rt = jnp.where(is_last, r, pltpu.roll(r, shift=R - 1, axis=0))    # r[j+1]
        rc = 0.75 * r
        return rc + 0.25 * lf, rc + 0.25 * rt

    o00, o01 = blend_w(r0)
    o10, o11 = blend_w(r1)

    dt = o_ref.dtype
    o_ref[0] = o00.reshape(TH, Wp, TOCs).astype(dt)   # out[2i,   2j]
    o_ref[1] = o01.reshape(TH, Wp, TOCs).astype(dt)   # out[2i,   2j+1]
    o_ref[2] = o10.reshape(TH, Wp, TOCs).astype(dt)   # out[2i+1, 2j]
    o_ref[3] = o11.reshape(TH, Wp, TOCs).astype(dt)   # out[2i+1, 2j+1]


# --------------------------------- wrapper -----------------------------------
def _pick_row_tile(H, Wp, Cp):
    """Largest TH in {8,16,32} whose per-step footprint fits the VMEM budget."""
    th = min(32, _round_up(H, 8))
    while th > 8:
        in_b = 2 * ((th + 2) * Wp * Cp * 2 + Cp * _LANE * 2)   # double-buffered inputs
        out_b = 2 * 4 * th * Wp * _LANE * 2                    # double-buffered output
        tmp_b = 8 * (th + 2) * Wp * _LANE * 4                  # f32/i32 temporaries
        if in_b + out_b + tmp_b <= _VMEM_BUDGET:
            break
        th = max(8, th // 2)
    return th


@jax.jit
def upsample_forward(x, weight):
    """UpSample.forward: bilinear 2x upsample (align_corners=False) followed by
    Conv2d(C, C//2, 1, bias=False).  x: (N, C, H, W) f32; weight: (OC, C, 1, 1).
    Returns (N, OC, 2H, 2W) f32."""
    N, C, H, W = x.shape
    OC = weight.shape[0]
    w2 = weight.reshape(OC, C)

    # 1x1 conv is pointwise over space, bilinear upsample is per-channel linear
    # over space -> they commute exactly.  Conv first at HxW, upsample in VMEM,
    # write the 2Hx2W tensor to HBM exactly once (bf16).
    Cp = _round_up(C, _LANE)             # MXU-aligned contraction dim (zero pad)
    OCc = _round_up(OC, _LANE)           # MXU-aligned weight width (compute only)
    n_oc = OCc // _LANE
    toc_store = OC if OC < _LANE else _LANE     # HBM writes stay unpadded for OC<128
    oc_out = OC if OC < _LANE else OCc

    Wp = _round_up(W, 16)                # keeps every reshape bf16/(8,128)-tile aligned
    TH = _pick_row_tile(H, Wp, Cp)       # row tiling bounds VMEM at any image size
    Hp = _round_up(H, TH)
    nT = Hp // TH

    # NHWC; clamp-replicate spatial padding (never leaks into kept outputs),
    # zero-pad channels, bf16 MXU operands.
    x_nhwc = jnp.transpose(x, (0, 2, 3, 1))
    x_p = jnp.pad(x_nhwc, ((0, 0), (0, Hp - H), (0, Wp - W), (0, 0)), mode="edge")
    x_p = jnp.pad(x_p, ((0, 0), (0, 0), (0, 0), (0, Cp - C))).astype(jnp.bfloat16)

    # Two clamped halo rows per row tile: the only H-overlap the kernel needs.
    rows_top = jnp.array([max(t * TH - 1, 0) for t in range(nT)], dtype=jnp.int32)
    rows_bot = jnp.array([min((t + 1) * TH, Hp - 1) for t in range(nT)], dtype=jnp.int32)
    halo = jnp.stack([x_p[:, rows_top], x_p[:, rows_bot]], axis=2)   # (N, nT, 2, Wp, Cp)

    w_mat = jnp.pad(w2.T, ((0, Cp - C), (0, OCc - OC))).astype(jnp.bfloat16)  # (Cp, OCc)

    try:    # size the VMEM limit from the actual part (v5e/v6e 128 MiB, v7x 64 MiB)
        vmem_cap = int(pltpu.get_tpu_info().vmem_capacity_bytes)
    except Exception:
        vmem_cap = 64 * 1024 * 1024
    vmem_limit = max(32 * 1024 * 1024,
                     min(vmem_cap - 8 * 1024 * 1024, 100 * 1024 * 1024))

    out = pl.pallas_call(
        _upsample_conv_kernel,
        out_shape=jax.ShapeDtypeStruct((N, 4, Hp, Wp, oc_out), jnp.bfloat16),
        grid_spec=pltpu.PrefetchScalarGridSpec(
            num_scalar_prefetch=0,
            grid=(N, nT, n_oc),          # oc innermost: the row tile stays VMEM-resident
            in_specs=[
                pl.BlockSpec((None, TH, Wp, Cp), lambda n, t, oc: (n, t, 0, 0)),
                pl.BlockSpec((None, None, 2, Wp, Cp), lambda n, t, oc: (n, t, 0, 0, 0)),
                pl.BlockSpec((Cp, _LANE), lambda n, t, oc: (0, oc)),
            ],
            out_specs=pl.BlockSpec((None, 4, TH, Wp, toc_store),
                                   lambda n, t, oc: (n, 0, t, 0, oc)),
        ),
        compiler_params=pltpu.CompilerParams(
            dimension_semantics=("parallel", "parallel", "arbitrary"),
            vmem_limit_bytes=vmem_limit,
        ),
    )(x_p, halo, w_mat)

    # (N, 4, Hp, Wp, oc_out) -> (N, OC, 2H, 2W): drop padding, un-interleave the
    # parities, go NCHW.  Runs on bf16 data and fuses with the final f32 cast.
    out = out[:, :, :H, :W, :OC]
    out = out.reshape(N, 2, 2, H, W, OC)
    out = out.transpose(0, 5, 3, 1, 4, 2).reshape(N, OC, 2 * H, 2 * W)
    return out.astype(jnp.float32)
    # TODO(synk): add a K (input-channel) grid axis with an f32 accumulator for
    # very large C where a (TH+2, Wp, Cp) input tile no longer fits in VMEM.


# ----------------------------- pure-JAX reference ----------------------------
def _upsample_bilinear_x2_ref(x):
    """Exact PyTorch formula: half-pixel centers, clamped source index."""
    def up1d(a, axis, size):
        o = jnp.arange(2 * size, dtype=jnp.float32)
        src = jnp.clip((o + 0.5) / 2.0 - 0.5, 0.0, float(size - 1))
        lo = jnp.floor(src).astype(jnp.int32)
        hi = jnp.minimum(lo + 1, size - 1)
        frac = src - lo.astype(jnp.float32)
        shape = [1] * a.ndim
        shape[axis] = 2 * size
        frac = frac.reshape(shape)
        return jnp.take(a, lo, axis=axis) * (1.0 - frac) + jnp.take(a, hi, axis=axis) * frac

    _, _, H, W = x.shape
    x = up1d(x, 2, H)
    x = up1d(x, 3, W)
    return x


def _upsample_module_ref(x, weight):
    xu = _upsample_bilinear_x2_ref(x)
    w2 = weight.reshape(weight.shape[0], x.shape[1])
    return jnp.einsum("nchw,oc->nohw", xu, w2)


# --------------------------------- demo / check ------------------------------
if __name__ == "__main__":
    key = jax.random.PRNGKey(0)
    kx, kw = jax.random.split(key)

    # UpSample(in_channels=4): bilinear x2 + Conv2d(4, 2, 1, bias=False)
    N, C, H, W = 2, 4, 16, 16
    OC = C // 2

    x = jax.random.normal(kx, (N, C, H, W), dtype=jnp.float32)
    bound = 1.0 / (C ** 0.5)   # Conv2d default init bound, fan_in = C*1*1
    weight = jax.random.uniform(kw, (OC, C, 1, 1), jnp.float32,
                                minval=-bound, maxval=bound)

    y = upsample_forward(x, weight)
    y = jax.block_until_ready(y)
    assert y.shape == (N, OC, 2 * H, 2 * W), y.shape

    ref = _upsample_module_ref(x, weight)
    max_err = float(jnp.max(jnp.abs(y - ref)))
    # bf16 MXU operands + bf16 HBM output (f32 accumulate / blend) => small
    # deviation vs the f32 reference.
    assert jnp.allclose(y, ref, atol=5e-2, rtol=5e-2), max_err

    print("KERNEL_OK")
</pallas_src>

<mosaic_0001>
module attributes {stable_mosaic.version = 11 : i64} {
  func.func @_upsample_conv_kernel(%arg0: i32, %arg1: i32, %arg2: i32, %arg3: memref<1x16x16x128xbf16, #tpu.memory_space<vmem>>, %arg4: memref<1x1x2x16x128xbf16, #tpu.memory_space<vmem>>, %arg5: memref<128x128xbf16, #tpu.memory_space<vmem>>, %arg6: memref<1x4x16x16x2xbf16, #tpu.memory_space<vmem>>) attributes {dimension_semantics = [#tpu.dimension_semantics<parallel>, #tpu.dimension_semantics<parallel>, #tpu.dimension_semantics<arbitrary>], iteration_bounds = array<i64: 2, 1, 1>, scalar_prefetch = 0 : i64, scratch_operands = 0 : i64, tpu.core_type = #tpu.core_type<tc>, window_params = [{transform_indices = @transform_0, window_bounds = array<i64: 1, 16, 16, 128>}, {transform_indices = @transform_1, window_bounds = array<i64: 1, 1, 2, 16, 128>}, {transform_indices = @transform_2, window_bounds = array<i64: 128, 128>}, {transform_indices = @transform_3, window_bounds = array<i64: 1, 4, 16, 16, 2>}]} {
    %c0 = arith.constant 0 : index
    %c0_0 = arith.constant 0 : index
    %c0_1 = arith.constant 0 : index
    %c0_2 = arith.constant 0 : index
    %c0_3 = arith.constant 0 : index
    %0 = vector.load %arg4[%c0, %c0_0, %c0_1, %c0_2, %c0_3] : memref<1x1x2x16x128xbf16, #tpu.memory_space<vmem>>, vector<1x1x1x16x128xbf16>
    %1 = vector.shape_cast %0 : vector<1x1x1x16x128xbf16> to vector<1x16x128xbf16>
    %c0_4 = arith.constant 0 : index
    %c0_5 = arith.constant 0 : index
    %c0_6 = arith.constant 0 : index
    %c0_7 = arith.constant 0 : index
    %2 = vector.load %arg3[%c0_4, %c0_5, %c0_6, %c0_7] : memref<1x16x16x128xbf16, #tpu.memory_space<vmem>>, vector<1x16x16x128xbf16>
    %3 = vector.shape_cast %2 : vector<1x16x16x128xbf16> to vector<16x16x128xbf16>
    %c0_8 = arith.constant 0 : index
    %c0_9 = arith.constant 0 : index
    %c1 = arith.constant 1 : index
    %c0_10 = arith.constant 0 : index
    %c0_11 = arith.constant 0 : index
    %4 = vector.load %arg4[%c0_8, %c0_9, %c1, %c0_10, %c0_11] : memref<1x1x2x16x128xbf16, #tpu.memory_space<vmem>>, vector<1x1x1x16x128xbf16>
    %5 = vector.shape_cast %4 : vector<1x1x1x16x128xbf16> to vector<1x16x128xbf16>
    %6 = tpu.concatenate %1, %3, %5 in 0 : vector<1x16x128xbf16>, vector<16x16x128xbf16>, vector<1x16x128xbf16> -> vector<18x16x128xbf16>
    %7 = vector.shape_cast %6 : vector<18x16x128xbf16> to vector<288x128xbf16>
    %c0_12 = arith.constant 0 : index
    %c0_13 = arith.constant 0 : index
    %8 = vector.load %arg5[%c0_12, %c0_13] : memref<128x128xbf16, #tpu.memory_space<vmem>>, vector<128x128xbf16>
    %cst = arith.constant dense<0.000000e+00> : vector<288x128xf32>
    %9 = tpu.matmul %7, %8, %cst {dimension_numbers = #tpu.dot_dimension_numbers<[1], [0], [0], [1], [0, 0, 1, 1], [], []>} : vector<288x128xbf16>, vector<128x128xbf16>, vector<288x128xf32> -> vector<288x128xf32>
    %10 = vector.extract_strided_slice %9 {offsets = [0, 0], sizes = [288, 2], strides = [1, 1]} : vector<288x128xf32> to vector<288x2xf32>
    %11 = vector.extract_strided_slice %10 {offsets = [16, 0], sizes = [256, 2], strides = [1, 1]} : vector<288x2xf32> to vector<256x2xf32>
    %cst_14 = arith.constant 7.500000e-01 : f32
    %12 = vector.broadcast %cst_14 : f32 to vector<256x2xf32>
    %13 = arith.mulf %12, %11 : vector<256x2xf32>
    %14 = vector.extract_strided_slice %10 {offsets = [0, 0], sizes = [256, 2], strides = [1, 1]} : vector<288x2xf32> to vector<256x2xf32>
    %cst_15 = arith.constant 2.500000e-01 : f32
    %15 = vector.broadcast %cst_15 : f32 to vector<256x2xf32>
    %16 = arith.mulf %15, %14 : vector<256x2xf32>
    %17 = arith.addf %13, %16 : vector<256x2xf32>
    %18 = vector.extract_strided_slice %10 {offsets = [32, 0], sizes = [256, 2], strides = [1, 1]} : vector<288x2xf32> to vector<256x2xf32>
    %cst_16 = arith.constant 2.500000e-01 : f32
    %19 = vector.broadcast %cst_16 : f32 to vector<256x2xf32>
    %20 = arith.mulf %19, %18 : vector<256x2xf32>
    %21 = arith.addf %13, %20 : vector<256x2xf32>
    %22 = tpu.iota {dimensions = array<i32: 1>} : vector<16x16x2xi32>
    %23 = vector.shape_cast %22 : vector<16x16x2xi32> to vector<256x2xi32>
    %c0_i32 = arith.constant 0 : i32
    %24 = vector.broadcast %c0_i32 : i32 to vector<256x2xi32>
    %25 = arith.cmpi eq, %23, %24 : vector<256x2xi32>
    %c15_i32 = arith.constant 15 : i32
    %26 = vector.broadcast %c15_i32 : i32 to vector<256x2xi32>
    %27 = arith.cmpi eq, %23, %26 : vector<256x2xi32>
    %c1_i32 = arith.constant 1 : i32
    %28 = tpu.dynamic_rotate %17 by %c1_i32 dim 0 : vector<256x2xf32>, i32 -> vector<256x2xf32>
    %29 = arith.select %25, %17, %28 : vector<256x2xi1>, vector<256x2xf32>
    %c255_i32 = arith.constant 255 : i32
    %30 = tpu.dynamic_rotate %17 by %c255_i32 dim 0 : vector<256x2xf32>, i32 -> vector<256x2xf32>
    %31 = arith.select %27, %17, %30 : vector<256x2xi1>, vector<256x2xf32>
    %cst_17 = arith.constant 7.500000e-01 : f32
    %32 = vector.broadcast %cst_17 : f32 to vector<256x2xf32>
    %33 = arith.mulf %32, %17 : vector<256x2xf32>
    %cst_18 = arith.constant 2.500000e-01 : f32
    %34 = vector.broadcast %cst_18 : f32 to vector<256x2xf32>
    %35 = arith.mulf %34, %29 : vector<256x2xf32>
    %36 = arith.addf %33, %35 : vector<256x2xf32>
    %cst_19 = arith.constant 2.500000e-01 : f32
    %37 = vector.broadcast %cst_19 : f32 to vector<256x2xf32>
    %38 = arith.mulf %37, %31 : vector<256x2xf32>
    %39 = arith.addf %33, %38 : vector<256x2xf32>
    %c1_i32_20 = arith.constant 1 : i32
    %40 = tpu.dynamic_rotate %21 by %c1_i32_20 dim 0 : vector<256x2xf32>, i32 -> vector<256x2xf32>
    %41 = arith.select %25, %21, %40 : vector<256x2xi1>, vector<256x2xf32>
    %c255_i32_21 = arith.constant 255 : i32
    %42 = tpu.dynamic_rotate %21 by %c255_i32_21 dim 0 : vector<256x2xf32>, i32 -> vector<256x2xf32>
    %43 = arith.select %27, %21, %42 : vector<256x2xi1>, vector<256x2xf32>
    %cst_22 = arith.constant 7.500000e-01 : f32
    %44 = vector.broadcast %cst_22 : f32 to vector<256x2xf32>
    %45 = arith.mulf %44, %21 : vector<256x2xf32>
    %cst_23 = arith.constant 2.500000e-01 : f32
    %46 = vector.broadcast %cst_23 : f32 to vector<256x2xf32>
    %47 = arith.mulf %46, %41 : vector<256x2xf32>
    %48 = arith.addf %45, %47 : vector<256x2xf32>
    %cst_24 = arith.constant 2.500000e-01 : f32
    %49 = vector.broadcast %cst_24 : f32 to vector<256x2xf32>
    %50 = arith.mulf %49, %43 : vector<256x2xf32>
    %51 = arith.addf %45, %50 : vector<256x2xf32>
    %52 = vector.shape_cast %36 : vector<256x2xf32> to vector<16x16x2xf32>
    %53 = arith.truncf %52 : vector<16x16x2xf32> to vector<16x16x2xbf16>
    %c0_25 = arith.constant 0 : index
    %c0_26 = arith.constant 0 : index
    %c0_27 = arith.constant 0 : index
    %c0_28 = arith.constant 0 : index
    %c0_29 = arith.constant 0 : index
    %54 = vector.load %arg6[%c0_25, %c0_26, %c0_27, %c0_28, %c0_29] : memref<1x4x16x16x2xbf16, #tpu.memory_space<vmem>>, vector<1x1x16x16x2xbf16>
    %55 = vector.shape_cast %54 : vector<1x1x16x16x2xbf16> to vector<16x16x2xbf16>
    %56 = vector.shape_cast %53 : vector<16x16x2xbf16> to vector<1x1x16x16x2xbf16>
    tpu.vector_store %arg6[%c0_25, %c0_26, %c0_27, %c0_28, %c0_29], %56 {strides = array<i32>} : memref<1x4x16x16x2xbf16, #tpu.memory_space<vmem>>, vector<1x1x16x16x2xbf16>,
    %57 = vector.shape_cast %39 : vector<256x2xf32> to vector<16x16x2xf32>
    %58 = arith.truncf %57 : vector<16x16x2xf32> to vector<16x16x2xbf16>
    %c0_30 = arith.constant 0 : index
    %c1_31 = arith.constant 1 : index
    %c0_32 = arith.constant 0 : index
    %c0_33 = arith.constant 0 : index
    %c0_34 = arith.constant 0 : index
    %59 = vector.load %arg6[%c0_30, %c1_31, %c0_32, %c0_33, %c0_34] : memref<1x4x16x16x2xbf16, #tpu.memory_space<vmem>>, vector<1x1x16x16x2xbf16>
    %60 = vector.shape_cast %59 : vector<1x1x16x16x2xbf16> to vector<16x16x2xbf16>
    %61 = vector.shape_cast %58 : vector<16x16x2xbf16> to vector<1x1x16x16x2xbf16>
    tpu.vector_store %arg6[%c0_30, %c1_31, %c0_32, %c0_33, %c0_34], %61 {strides = array<i32>} : memref<1x4x16x16x2xbf16, #tpu.memory_space<vmem>>, vector<1x1x16x16x2xbf16>,
    %62 = vector.shape_cast %48 : vector<256x2xf32> to vector<16x16x2xf32>
    %63 = arith.truncf %62 : vector<16x16x2xf32> to vector<16x16x2xbf16>
    %c0_35 = arith.constant 0 : index
    %c2 = arith.constant 2 : index
    %c0_36 = arith.constant 0 : index
    %c0_37 = arith.constant 0 : index
    %c0_38 = arith.constant 0 : index
    %64 = vector.load %arg6[%c0_35, %c2, %c0_36, %c0_37, %c0_38] : memref<1x4x16x16x2xbf16, #tpu.memory_space<vmem>>, vector<1x1x16x16x2xbf16>
    %65 = vector.shape_cast %64 : vector<1x1x16x16x2xbf16> to vector<16x16x2xbf16>
    %66 = vector.shape_cast %63 : vector<16x16x2xbf16> to vector<1x1x16x16x2xbf16>
    tpu.vector_store %arg6[%c0_35, %c2, %c0_36, %c0_37, %c0_38], %66 {strides = array<i32>} : memref<1x4x16x16x2xbf16, #tpu.memory_space<vmem>>, vector<1x1x16x16x2xbf16>,
    %67 = vector.shape_cast %51 : vector<256x2xf32> to vector<16x16x2xf32>
    %68 = arith.truncf %67 : vector<16x16x2xf32> to vector<16x16x2xbf16>
    %c0_39 = arith.constant 0 : index
    %c3 = arith.constant 3 : index
    %c0_40 = arith.constant 0 : index
    %c0_41 = arith.constant 0 : index
    %c0_42 = arith.constant 0 : index
    %69 = vector.load %arg6[%c0_39, %c3, %c0_40, %c0_41, %c0_42] : memref<1x4x16x16x2xbf16, #tpu.memory_space<vmem>>, vector<1x1x16x16x2xbf16>
    %70 = vector.shape_cast %69 : vector<1x1x16x16x2xbf16> to vector<16x16x2xbf16>
    %71 = vector.shape_cast %68 : vector<16x16x2xbf16> to vector<1x1x16x16x2xbf16>
    tpu.vector_store %arg6[%c0_39, %c3, %c0_40, %c0_41, %c0_42], %71 {strides = array<i32>} : memref<1x4x16x16x2xbf16, #tpu.memory_space<vmem>>, vector<1x1x16x16x2xbf16>,
    return
  }
  func.func @transform_0(%arg0: i32, %arg1: i32, %arg2: i32) -> (i32, i32, i32, i32) {
    %c0_i32 = arith.constant 0 : i32
    %c0_i32_0 = arith.constant 0 : i32
    %c0_i32_1 = arith.constant 0 : i32
    return %arg0, %arg1, %c0_i32, %c0_i32_0 : i32, i32, i32, i32
  }
  func.func @transform_1(%arg0: i32, %arg1: i32, %arg2: i32) -> (i32, i32, i32, i32, i32) {
    %c0_i32 = arith.constant 0 : i32
    %c0_i32_0 = arith.constant 0 : i32
    %c0_i32_1 = arith.constant 0 : i32
    %c0_i32_2 = arith.constant 0 : i32
    return %arg0, %arg1, %c0_i32, %c0_i32_0, %c0_i32_1 : i32, i32, i32, i32, i32
  }
  func.func @transform_2(%arg0: i32, %arg1: i32, %arg2: i32) -> (i32, i32) {
    %c0_i32 = arith.constant 0 : i32
    %c0_i32_0 = arith.constant 0 : i32
    return %c0_i32, %arg2 : i32, i32
  }
  func.func @transform_3(%arg0: i32, %arg1: i32, %arg2: i32) -> (i32, i32, i32, i32, i32) {
    %c0_i32 = arith.constant 0 : i32
    %c0_i32_0 = arith.constant 0 : i32
    %c0_i32_1 = arith.constant 0 : i32
    return %arg0, %c0_i32, %arg1, %c0_i32_0, %arg2 : i32, i32, i32, i32, i32
  }
}

</mosaic_0001>

<bundles_post_ra>
// kernel: upsample_forward.1
= control target key start
LH: loop header
LB: loop body
LE: loop exit
PB: predicated region body
PF: predicated region fallthrough
CT: control target
= control target key end

     0   :  { %s2887_s12 = smov 0   ;;  %s2889_s13 = smov 0   ;;  %s4719_s0 = inlined_call_operand.vmem [shape: bf16[2,16,16,128], index: 0, kind: input, shape index: {}]   ;;  %s4720_s1 = inlined_call_operand.vmem [shape: bf16[2,1,2,16,128], index: 1, kind: input, shape index: {}]   ;;  %s4721_s2 = inlined_call_operand.vmem [shape: bf16[128,128], index: 2, kind: input, shape index: {}]   ;;  %s4722_s3 = inlined_call_operand.vmem [shape: bf16[2,4,16,16,2], index: 3, kind: output, shape index: {}]  }
   0x1   :  { %s2891_s14 = smov 0  }
   0x2 LB: > { %s32_s15 = sadd.s32 1, %s2861_s13  ;;  %p2307_p0 = scmp.ge.s32.totalorder %s2865_s14, 1  ;;  %s2865_s14 = sphi %s2891_s14, %s13_s14   ;;  %s2861_s13 = sphi %s2889_s13, %s4869_s13   ;;  %s2857_s12 = sphi %s2887_s12, %s4868_s12  }
   0x3   : > { %p34_p1 = scmp.ge.s32.totalorder %s32_s15, 2  ;;  %p193_p2 = scmp.lt.s32.totalorder %s2865_s14, 3 }
   0x5   : > { %s4871_s15 = smov (%p34_p1, %s32_s15), 0  ;;  %p194_p3 = pnand %p2307_p0, %p193_p2 }
   0x7   : > { %197 = sbr.rel (%p194_p3) target bundleno = 510 (0x1fe), region = 32 }
   0xe   : > { %v2817_v0 = vld [vmem:[%s4721_s2] sm:$0xff]   ;;  %p244_p4 = scmp.lt.s32.totalorder %s2857_s12, 1  ;;  %v2818_v1 = vld [vmem:[%s4721_s2 + $0x8] sm:$0xff]   ;;  %v2819_v2 = vld [vmem:[%s4721_s2 + $0x10] sm:$0xff]   ;;  %v800_v26 = vlaneseq  ;;  %vm1641_vm2 = vcmask 11264  }
   0xf   : > { %2725 = vmatprep.subr.bf16.mxu0 %v2817_v0  ;;  %2777 = vmatprep.subr.bf16.mxu1 %v2817_v0  ;;  %v2820_v3 = vld [vmem:[%s4721_s2 + $0x18] sm:$0xff]   ;;  %v2821_v6 = vld [vmem:[%s4721_s2 + $0x20] sm:$0xff]   ;;  %v2822_v7 = vld [vmem:[%s4721_s2 + $0x28] sm:$0xff]  }
  0x10   : > { %s4873_s12 = smov (!%p244_p4, %s2857_s12), 1  ;;  %2726 = vmatpush3.bf16.msra.mxu0 %v2817_v0  ;;  %2785 = vmatpush3.bf16.msra.mxu1 %v2817_v0  ;;  %v2823_v8 = vld [vmem:[%s4721_s2 + $0x30] sm:$0xff]   ;;  %v2824_v9 = vld [vmem:[%s4721_s2 + $0x38] sm:$0xff]   ;;  %v2961_v27 = vshrl.u32 %v800_v26, 7 }
  0x11   : > { %2727 = vmatprep.subr.bf16.mxu0 %v2818_v1  ;;  %2778 = vmatprep.subr.bf16.mxu1 %v2818_v1  ;;  %s2568_s22 = sshll.u32 %s4873_s12, 7  ;;  %s2569_s23 = sshll.u32 %s4873_s12, 4 }
  0x12   : > { %s2921_s26 = scalar_lea.vmem %s4719_s0, %s2568_s22  ;;  %s2926_s29 = scalar_lea.vmem %s4720_s1, %s2569_s23  ;;  %vm839_vm0 = vcmp.lt.s32.totalorder %v2961_v27, 1  ;;  %vm936_vm1 = vcmp.lt.s32.totalorder %v2961_v27, 7  ;;  %v2982_v45 = vadd.s32 8, %v2961_v27  ;;  %vm803_vm3 = vcmp.eq.s32.totalorder %v2961_v27, 0 }
  0x13   : > { %v2825_v4 = vld [vmem:[%s2926_s29] sm:$0xff]   ;;  %v2826_v5 = vld [vmem:[%s2921_s26 + $0x48] sm:$0xff]   ;;  %v2828_v11 = vld [vmem:[%s2921_s26 + $0x50] sm:$0xff]   ;;  %s2570_s17 = sshll.u32 %s4873_s12, 9 }
  0x14   : > { %2728 = vmatpush3.bf16.msra.mxu0 %v2818_v1  ;;  %2786 = vmatpush3.bf16.msra.mxu1 %v2818_v1  ;;  %v2827_v10 = vld [vmem:[%s2921_s26] sm:$0xff]   ;;  %v2829_v12 = vld [vmem:[%s2921_s26 + $0x8] sm:$0xff]   ;;  %v2830_v13 = vld [vmem:[%s2921_s26 + $0x58] sm:$0xff]   ;;  %vm806_vm4 = vcmp.eq.s32.totalorder %v2982_v45, 15  ;;  %s3092_s19 = scalar_lea.vmem %s4722_s3, %s2570_s17 }
  0x15   : > { %2729 = vmatprep.subr.bf16.mxu0 %v2819_v2  ;;  %2779 = vmatprep.subr.bf16.mxu1 %v2819_v2  ;;  %v2831_v14 = vld [vmem:[%s2921_s26 + $0x10] sm:$0xff]   ;;  %v2832_v15 = vld [vmem:[%s2921_s26 + $0x60] sm:$0xff]   ;;  %v2833_v16 = vld [vmem:[%s2921_s26 + $0x18] sm:$0xff]  }
  0x16   : > { %2741 = vmatprep.mubr.bf16.mxu0 %v2825_v4  ;;  %2761 = vmatprep.mubr.bf16.mxu1 %v2826_v5  ;;  %v2834_v17 = vld [vmem:[%s2921_s26 + $0x68] sm:$0xff]   ;;  %v2835_v18 = vld [vmem:[%s2921_s26 + $0x20] sm:$0xff]   ;;  %v2836_v19 = vld [vmem:[%s2921_s26 + $0x70] sm:$0xff]  }
  0x17   : > { %v2837_v20 = vld [vmem:[%s2921_s26 + $0x28] sm:$0xff]   ;;  %v2838_v21 = vld [vmem:[%s2921_s26 + $0x78] sm:$0xff]   ;;  %v2839_v22 = vld [vmem:[%s2921_s26 + $0x30] sm:$0xff]  }
  0x18   : > { %2730 = vmatpush3.bf16.msra.mxu0 %v2819_v2  ;;  %2787 = vmatpush3.bf16.msra.mxu1 %v2819_v2  ;;  %v2840_v23 = vld [vmem:[%s2926_s29 + $0x8] sm:$0xff]   ;;  %v2841_v24 = vld [vmem:[%s2921_s26 + $0x38] sm:$0xff]   ;;  %v2842_v25 = vld [vmem:[%s2921_s26 + $0x40] sm:$0xff]  }
  0x19   : > { %2731 = vmatprep.subr.bf16.mxu0 %v2820_v3  ;;  %2780 = vmatprep.subr.bf16.mxu1 %v2820_v3 }
  0x1c   : > { %2732 = vmatpush3.bf16.msra.mxu0 %v2820_v3  ;;  %2788 = vmatpush3.bf16.msra.mxu1 %v2820_v3 }
  0x1d   : > { %2733 = vmatprep.subr.bf16.mxu0 %v2821_v6  ;;  %2781 = vmatprep.subr.bf16.mxu1 %v2821_v6 }
  0x20   : > { %2734 = vmatpush3.bf16.msra.mxu0 %v2821_v6  ;;  %2789 = vmatpush3.bf16.msra.mxu1 %v2821_v6 }
  0x21   : > { %2735 = vmatprep.subr.bf16.mxu0 %v2822_v7  ;;  %2782 = vmatprep.subr.bf16.mxu1 %v2822_v7 }
  0x24   : > { %2736 = vmatpush3.bf16.msra.mxu0 %v2822_v7  ;;  %2790 = vmatpush3.bf16.msra.mxu1 %v2822_v7 }
  0x25   : > { %2737 = vmatprep.subr.bf16.mxu0 %v2823_v8  ;;  %2783 = vmatprep.subr.bf16.mxu1 %v2823_v8 }
  0x28   : > { %2738 = vmatpush3.bf16.msra.mxu0 %v2823_v8  ;;  %2791 = vmatpush3.bf16.msra.mxu1 %v2823_v8 }
  0x29   : > { %2739 = vmatprep.subr.bf16.mxu0 %v2824_v9  ;;  %2784 = vmatprep.subr.bf16.mxu1 %v2824_v9 }
  0x2c   : > { %2740 = vmatpush3.bf16.msra.mxu0 %v2824_v9  ;;  %2792 = vmatpush3.bf16.msra.mxu1 %v2824_v9 }
  0x2f   : > { %2742 = vmatmul.mubr.bf16.vlgmr.msra.gmra.mrb[0].mxu0 %v2827_v10  ;;  %2762 = vmatmul.mubr.bf16.vlgmr.msra.gmra.mrb[0].mxu1 %v2828_v11 }
  0x30   : > { %2745 = vmatprep.mubr.bf16.mxu0 %v2829_v12  ;;  %2765 = vmatprep.mubr.bf16.mxu1 %v2830_v13 }
  0x37   : > { %2746 = vmatmul.mubr.bf16.gmra.mrb[4].mxu0 %v2831_v14  ;;  %2766 = vmatmul.mubr.bf16.gmra.mrb[4].mxu1 %v2832_v15 }
  0x38   : > { %2749 = vmatprep.mubr.bf16.mxu0 %v2833_v16  ;;  %2769 = vmatprep.mubr.bf16.mxu1 %v2834_v17 }
  0x3f   : > { %2750 = vmatmul.mubr.bf16.gmra.mrb[8].mxu0 %v2835_v18  ;;  %2770 = vmatmul.mubr.bf16.gmra.mrb[8].mxu1 %v2836_v19 }
  0x40   : > { %2753 = vmatprep.mubr.bf16.mxu0 %v2837_v20  ;;  %2773 = vmatprep.mubr.bf16.mxu1 %v2838_v21 }
  0x47   : > { %2754 = vmatmul.mubr.bf16.gmra.mrb[12].mxu0 %v2839_v22  ;;  %2774 = vmatmul.mubr.bf16.gmra.mrb[12].mxu1 %v2840_v23 }
  0x48   : > { %2757 = vmatprep.mubr.bf16.mxu0 %v2841_v24 }
  0x4f   : > { %2758 = vmatmul.mubr.bf16.gmra.mrb[16].mxu0 %v2842_v25 }
 0x102   : > { %v2743_v28 = vpop.f32.mrb[0].mxu0  ;;  %v2763_v29 = vpop.f32.mrb[0].mxu1 }
 0x103   : > { %v2963_v30 = vmul.f32 0.75, %v2743_v28  ;;  %v525_v31 = vpop.f32.mrb[1].mxu0  ;;  %v2965_v32 = vmul.f32 0.75, %v2763_v29  ;;  %v2967_v33 = vmul.f32 0.25, %v2763_v29  ;;  %v605_v34 = vpop.f32.mrb[1].mxu1  ;;  %v2975_v40 = vmul.f32 0.25, %v2743_v28 }
 0x104   : > { %v700_v35 = vmul.f32 0.25, %v525_v31  ;;  %v2744_v36 = vpop.f32.mrb[2].mxu0  ;;  %v2971_v37 = vmul.f32 0.75, %v605_v34  ;;  %v2973_v38 = vmul.f32 0.25, %v605_v34  ;;  %v2764_v39 = vpop.f32.mrb[2].mxu1 }
 0x105   : > { %v2977_v41 = vmul.f32 0.75, %v2744_v36  ;;  %v2979_v42 = vmul.f32 0.25, %v2744_v36  ;;  %v528_v43 = vpop.f32.mrb[3].mxu0  ;;  %v608_v44 = vpop.f32.mrb[3].mxu1  ;;  %v2995_v50 = vmul.f32 0.75, %v2764_v39  ;;  %v2997_v51 = vmul.f32 0.25, %v2764_v39 }
 0x106   : > { %4770 = vst [vmem:[#allocation2_spill] sm:$0xff] %v2971_v37  ;;  %4771 = vst [vmem:[#allocation3_spill] sm:$0xff] %v2973_v38  ;;  %v2985_v46 = vadd.f32 %v700_v35, %v2963_v30  ;;  %v701_v47 = vmul.f32 0.25, %v528_v43  ;;  %v2989_v48 = vadd.f32 %v2973_v38, %v2965_v32  ;;  %v2993_v49 = vadd.f32 %v2967_v33, %v2971_v37 }
 0x107   : > { %v2999_v52 = vmul.f32 0.75, %v608_v44  ;;  %v3001_v53 = vmul.f32 0.25, %v608_v44 }
 0x108   : > { %4772 = vst [vmem:[#allocation4_spill] sm:$0xff] %v2985_v46  ;;  %4773 = vst [vmem:[#allocation5_spill] sm:$0xff] %v2989_v48  ;;  %v4728_v54 = vrot.slane %v2985_v46, 7  ;;  %v4727_v55 = vrot.slane %v2985_v46, 1  ;;  %v3006_v56 = vmul.f32 0.75, %v2985_v46  ;;  %v3009_v57 = vadd.f32 %v701_v47, %v2977_v41 }
 0x109   : > { %4774 = vst [vmem:[#allocation6_spill] sm:$0xff] %v2993_v49  ;;  %4775 = vst [vmem:[#allocation7_spill] sm:$0xff] %v2999_v52  ;;  %v4726_v58 = vrot.slane %v2989_v48, 7  ;;  %v4725_v59 = vrot.slane %v2989_v48, 1  ;;  %v3014_v60 = vmul.f32 0.75, %v2989_v48  ;;  %v4724_v61 = vrot.slane %v2993_v49, 7 }
 0x10a   : > { %4776 = vst [vmem:[#allocation8_spill] sm:$0xff] %v3001_v53  ;;  %4777 = vst [vmem:[#allocation9_spill] sm:$0xff] %v3006_v56  ;;  %v808_v62 = vrot.slane %v3009_v57, 7  ;;  %v905_v63 = vrot.slane %v3009_v57, 1  ;;  %v3020_v0 = vmul.f32 0.75, %v3009_v57  ;;  %v4723_v1 = vrot.slane %v2993_v49, 1 }
 0x10b   : > { %4778 = vst [vmem:[#allocation10_spill] sm:$0xff] %v3014_v60  ;;  %v2747_v2 = vpop.f32.mrb[4].mxu0  ;;  %v2767_v3 = vpop.f32.mrb[4].mxu1  ;;  %v3024_v4 = vmul.f32 0.75, %v2993_v49  ;;  %v3028_v5 = vadd.f32 %v3001_v53, %v2995_v50  ;;  %v3032_v6 = vadd.f32 %v2997_v51, %v2999_v52 }
 0x10c   : > { %v3034_v7 = vmul.f32 0.75, %v2747_v2  ;;  %v541_v8 = vpop.f32.mrb[5].mxu0  ;;  %v3036_v9 = vpop.f32.mrb[5].mxu1  ;;  %v870_v10 = vsel %vm839_vm0, %v4728_v54, %v808_v62  ;;  %v967_v11 = vsel %vm936_vm1, %v4727_v55, %v905_v63  ;;  %v3051_v12 = vmul.f32 0.25, %v2747_v2 }
 0x10d   : > { %4779 = vst [vmem:[#allocation11_spill] sm:$0xff] %v3024_v4  ;;  %v3053_v13 = vmul.f32 0.75, %v2767_v3  ;;  %v3055_v14 = vpop.f32.mrb[6].mxu0  ;;  %v3057_v15 = vpop.f32.mrb[6].mxu1  ;;  %v1034_v16 = vmul.f32 0.25, %v870_v10  ;;  %v1097_v17 = vmul.f32 0.25, %v967_v11 }
 0x10e   : > { %v4734_v18 = vrot.slane %v3028_v5, 7  ;;  %v4733_v19 = vrot.slane %v3028_v5, 1  ;;  %v3061_v20 = vpop.f32.mrb[7].mxu0  ;;  %v3063_v21 = vpop.f32.mrb[7].mxu1  ;;  %v3066_v22 = vmul.f32 0.75, %v3028_v5  ;;  %v4732_v23 = vrot.slane %v3032_v6, 7 }
 0x10f   : > { %v4731_v24 = vrot.slane %v3032_v6, 1  ;;  %v3071_v25 = vmul.f32 0.75, %v3032_v6  ;;  %v1066_v26 = vadd.f32 %v1034_v16, %v3020_v0  ;;  %v1129_v28 = vadd.f32 %v1097_v17, %v3006_v56 }
 0x110   : > { %v850_v29 = vsel %vm839_vm0, %v4726_v58, %v4734_v18  ;;  %v947_v31 = vsel %vm936_vm1, %v4725_v59, %v4733_v19  ;;  %v1205_v36 = vsel %vm839_vm0, %v4724_v61, %v4732_v23  ;;  %v3108_v16 = vmul.f32 0.25, %v2767_v3 }
 0x111   : > { %v1054_v34 = vmul.f32 0.25, %v850_v29  ;;  %v1117_v35 = vmul.f32 0.25, %v947_v31  ;;  %v1301_v39 = vsel %vm936_vm1, %v4723_v1, %v4731_v24  ;;  %v2572_v43 = vpack.c.bf16 %v1066_v26, %v1066_v26 }
 0x112   : > { %v2603_v44 = vpack.c.bf16 %v1129_v28, %v1129_v28  ;;  %v1404_v47 = vmul.f32 0.25, %v1205_v36  ;;  %v1467_v2 = vmul.f32 0.25, %v1301_v39  ;;  %v670_v17 = vmul.f32 0.75, %v541_v8  ;;  %v3110_v29 = vpop.f32.mrb[8].mxu0  ;;  %v3112_v31 = vpop.f32.mrb[8].mxu1 }
 0x113   : > { %v1086_v10 = vadd.f32 %v1054_v34, %v3066_v22  ;;  %v1149_v11 = vadd.f32 %v1117_v35, %v3014_v60  ;;  %1643 = vst.msk [vmem:[%s3092_s19 + $0x4] sm:$0xf] %vm1641_vm2, %v2572_v43  ;;  %v704_v36 = vmul.f32 0.25, %v541_v8  ;;  %v690_v34 = vmul.f32 0.75, %v3036_v9  ;;  %v3121_v3 = vpop.f32.mrb[9].mxu0  ;;  %v3123_v35 = vpop.f32.mrb[9].mxu1 }
 0x114   : > { %2406 = vst.msk [vmem:[%s3092_s19 + $0x80] sm:$0xf] %vm1641_vm2, %v2603_v44  ;;  %v1436_v26 = vadd.f32 %v1404_v47, %v3071_v25  ;;  %v1499_v28 = vadd.f32 %v1467_v2, %v3024_v4  ;;  %v3126_v61 = vadd.f32 %v2975_v40, %v670_v17  ;;  %v3129_v43 = vadd.f32 %v3051_v12, %v670_v17  ;;  %v3131_v44 = vpop.f32.mrb[10].mxu0  ;;  %v3133_v8 = vpop.f32.mrb[10].mxu1 }
 0x115   : > { %v2592_v39 = vpack.c.bf16 %v1086_v10, %v1086_v10  ;;  %v2623_v1 = vpack.c.bf16 %v1149_v11, %v1149_v11  ;;  %v3136_v59 = vadd.f32 %v704_v36, %v3034_v7  ;;  %v3139_v10 = vadd.f32 %v704_v36, %v2963_v30  ;;  %v3141_v11 = vpop.f32.mrb[11].mxu0  ;;  %v3143_v40 = vpop.f32.mrb[11].mxu1 }
 0x116   : > { %v2654_v47 = vpack.c.bf16 %v1436_v26, %v1436_v26  ;;  %v2685_v2 = vpack.c.bf16 %v1499_v28, %v1499_v28  ;;  %v4729_v17 = vrot.slane %v3126_v61, 7  ;;  %v4730_v58 = vrot.slane %v3126_v61, 1 }
 0x117   : > { %1663 = vst.msk [vmem:[%s3092_s19 + $0x54] sm:$0xf] %vm1641_vm2, %v2592_v39  ;;  %2426 = vst.msk [vmem:[%s3092_s19 + $0xd0] sm:$0xf] %vm1641_vm2, %v2623_v1  ;;  %v3152_v26 = vmul.f32 0.75, %v3126_v61  ;;  %v3162_v39 = vmul.f32 0.75, %v3136_v59  ;;  %v3193_v54 = vadd.f32 %v2967_v33, %v690_v34  ;;  %v3200_v30 = vadd.f32 %v3108_v16, %v690_v34 }
 0x118   : > { %2489 = vst.msk [vmem:[%s3092_s19 + $0x14c] sm:$0xf] %vm1641_vm2, %v2654_v47  ;;  %2552 = vst.msk [vmem:[%s3092_s19 + $0x1c8] sm:$0xf] %vm1641_vm2, %v2685_v2  ;;  %v869_v55 = vsel %vm839_vm0, %v808_v62, %v4729_v17  ;;  %v966_v47 = vsel %vm936_vm1, %v905_v63, %v4730_v58  ;;  %v3186_v62 = vmul.f32 0.75, %v3139_v10  ;;  %v3189_v36 = vmul.f32 0.75, %v3129_v43 }
 0x119   : > { %v874_v1 = vsel %vm803_vm3, %v3126_v61, %v869_v55  ;;  %v970_v28 = vsel %vm806_vm4, %v3009_v57, %v966_v47  ;;  %v724_v2 = vmul.f32 0.25, %v3036_v9  ;;  %v3203_v57 = vmul.f32 0.75, %v3055_v14 }
 0x11a   : > { %v1035_v17 = vmul.f32 0.25, %v874_v1  ;;  %v1098_v63 = vmul.f32 0.25, %v970_v28  ;;  %v3195_v58 = vpop.f32.mrb[12].mxu0  ;;  %v3197_v55 = vpop.f32.mrb[12].mxu1  ;;  %v3206_v47 = vmul.f32 0.25, %v3055_v14  ;;  %v3209_v28 = vmul.f32 0.75, %v3057_v15 }
 0x11b   : > { %4780 = vst [vmem:[#allocation12_spill] sm:$0xff] %v3195_v58  ;;  %4781 = vst [vmem:[#allocation13_spill] sm:$0xff] %v3197_v55  ;;  %v3211_v9 = vpop.f32.mrb[13].mxu0  ;;  %v3213_v33 = vpop.f32.mrb[13].mxu1  ;;  %v3218_v34 = vadd.f32 %v724_v2, %v3053_v13  ;;  %v3221_v23 = vadd.f32 %v724_v2, %v2965_v32  ;;  %v4744_v18 = vrot.slane %v3193_v54, 7  ;;  %v4788_v53 = vrot.slane %v3028_v5, 7 }
 0x11c   : > { %4782 = vst [vmem:[#allocation14_spill] sm:$0xff] %v3211_v9  ;;  %4783 = vst [vmem:[#allocation15_spill] sm:$0xff] %v3213_v33  ;;  %v1067_v1 = vadd.f32 %v1035_v17, %v3152_v26  ;;  %v1130_v24 = vadd.f32 %v1098_v63, %v3020_v0  ;;  %v3223_v19 = vpop.f32.mrb[14].mxu0  ;;  %v3225_v14 = vpop.f32.mrb[14].mxu1  ;;  %v3230_v17 = vmul.f32 0.75, %v3193_v54  ;;  %v4789_v52 = vrot.slane %v3193_v54, 1 }
 0x11d   : > { %4784 = vst [vmem:[#allocation16_spill] sm:$0xff] %v3223_v19  ;;  %4785 = vst [vmem:[#allocation17_spill] sm:$0xff] %v3225_v14  ;;  %v3233_v63 = vpop.f32.mrb[15].mxu0  ;;  %v3235_v60 = vpop.f32.mrb[15].mxu1  ;;  %v849_v4 = vsel %vm839_vm0, %v4788_v53, %v4744_v18  ;;  %v4790_v0 = vrot.slane %v3028_v5, 1  ;;  %v4748_v18 = vrot.slane %v3221_v23, 1 }
 0x11e   : > { %4786 = vst [vmem:[#allocation18_spill] sm:$0xff] %v3233_v63  ;;  %4787 = vst [vmem:[#allocation19_spill] sm:$0xff] %v3235_v60  ;;  %v2573_v32 = vpack.c.bf16 %v1067_v1, %v1067_v1  ;;  %v2604_v2 = vpack.c.bf16 %v1130_v24, %v1130_v24  ;;  %v3252_v24 = vmul.f32 0.75, %v3218_v34  ;;  %v4746_v1 = vrot.slane %v3221_v23, 7 }
 0x11f   : > { %v946_v37 = vsel %vm936_vm1, %v4790_v0, %v4789_v52  ;;  %v894_v53 = vsel %vm803_vm3, %v3193_v54, %v849_v4  ;;  %v3274_v38 = vmul.f32 0.75, %v3221_v23  ;;  %v4792_v4 = vrot.slane %v3032_v6, 1 }
 0x120   : > { %1644 = vst.msk [vmem:[%s3092_s19 + $0x8] sm:$0xf] %vm1641_vm2, %v2573_v32  ;;  %2407 = vst.msk [vmem:[%s3092_s19 + $0x84] sm:$0xf] %vm1641_vm2, %v2604_v2  ;;  %v990_v48 = vsel %vm806_vm4, %v3028_v5, %v946_v37  ;;  %v1055_v0 = vmul.f32 0.25, %v894_v53  ;;  %v4791_v32 = vrot.slane %v3032_v6, 7 }
 0x121   : > { %v1118_v49 = vmul.f32 0.25, %v990_v48  ;;  %v1300_v48 = vsel %vm936_vm1, %v4792_v4, %v4748_v18  ;;  %v3286_v5 = vmul.f32 0.75, %v3200_v30  ;;  %v3289_v53 = vmul.f32 0.25, %v3057_v15 }
 0x122   : > { %v1204_v2 = vsel %vm839_vm0, %v4791_v32, %v4746_v1  ;;  %v1087_v32 = vadd.f32 %v1055_v0, %v3230_v17  ;;  %v671_v4 = vmul.f32 0.75, %v3061_v20  ;;  %v705_v18 = vmul.f32 0.25, %v3061_v20 }
 0x123   : > { %v1245_v37 = vsel %vm803_vm3, %v3221_v23, %v1204_v2  ;;  %v1150_v52 = vadd.f32 %v1118_v49, %v3066_v22  ;;  %v1340_v2 = vsel %vm806_vm4, %v3032_v6, %v1300_v48  ;;  %v3299_v46 = vmul.f32 0.75, %v3063_v21 }
 0x124   : > { %v1405_v1 = vmul.f32 0.25, %v1245_v37  ;;  %v1468_v56 = vmul.f32 0.25, %v1340_v2  ;;  %v2593_v0 = vpack.c.bf16 %v1087_v32, %v1087_v32  ;;  %v3303_v49 = vmul.f32 0.25, %v3063_v21 }
 0x125   : > { %v2624_v60 = vpack.c.bf16 %v1150_v52, %v1150_v52  ;;  %v735_v6 = vadd.f32 %v2979_v42, %v671_v4  ;;  %v3308_v37 = vadd.f32 %v705_v18, %v3203_v57  ;;  %v769_v20 = vadd.f32 %v705_v18, %v2977_v41 }
 0x126   : > { %v1437_v15 = vadd.f32 %v1405_v1, %v3274_v38  ;;  %v1500_v22 = vadd.f32 %v1468_v56, %v3071_v25  ;;  %1664 = vst.msk [vmem:[%s3092_s19 + $0x58] sm:$0xf] %vm1641_vm2, %v2593_v0  ;;  %v3316_v52 = vadd.f32 %v3206_v47, %v671_v4  ;;  %v3320_v21 = vadd.f32 %v2997_v51, %v3299_v46 }
 0x127   : > { %2427 = vst.msk [vmem:[%s3092_s19 + $0xd4] sm:$0xf] %vm1641_vm2, %v2624_v60  ;;  %v3324_v42 = vadd.f32 %v3303_v49, %v3209_v28  ;;  %v810_v25 = vrot.slane %v735_v6, 7  ;;  %v4753_v41 = vrot.slane %v3308_v37, 7  ;;  %v907_v18 = vrot.slane %v735_v6, 1 }
 0x128   : > { %v2655_v1 = vpack.c.bf16 %v1437_v15, %v1437_v15  ;;  %v2686_v56 = vpack.c.bf16 %v1500_v22, %v1500_v22  ;;  %v1004_v48 = vmul.f32 0.75, %v735_v6  ;;  %v3331_v32 = vmul.f32 0.75, %v3308_v37 }
 0x129   : > { %v1162_v2 = vrot.slane %v769_v20, 7  ;;  %v4793_v51 = vrot.slane %v3136_v59, 7  ;;  %v4795_v22 = vrot.slane %v3126_v61, 7  ;;  %v4796_v60 = vrot.slane %v3136_v59, 1 }
 0x12a   : > { %2490 = vst.msk [vmem:[%s3092_s19 + $0x150] sm:$0xf] %vm1641_vm2, %v2655_v1  ;;  %2553 = vst.msk [vmem:[%s3092_s19 + $0x1cc] sm:$0xf] %vm1641_vm2, %v2686_v56  ;;  %v4799_v14 = vrot.slane %v3126_v61, 1  ;;  %v4759_v58 = vrot.slane %v3316_v52, 7 }
 0x12b   : > { %v866_v4 = vsel %vm839_vm0, %v4793_v51, %v4753_v41  ;;  %v4794_v15 = vmov %v4793_v51  ;;  %v868_v1 = vsel %vm839_vm0, %v4795_v22, %v810_v25  ;;  %v964_v56 = vsel %vm936_vm1, %v907_v18, %v4796_v60 }
 0x12c   : > { %v867_v0 = vsel %vm839_vm0, %v810_v25, %v4794_v15  ;;  %v4797_v51 = vrot.slane %v3308_v37, 1  ;;  %v4798_v41 = vmov %v4796_v60  ;;  %v965_v25 = vsel %vm936_vm1, %v4799_v14, %v907_v18  ;;  %v3376_v18 = vpop.f32.mrb[16].mxu0 }
 0x12d   : > { %v876_v63 = vsel %vm803_vm3, %v3136_v59, %v867_v0  ;;  %v972_v22 = vsel %vm806_vm4, %v735_v6, %v964_v56  ;;  %v1036_v60 = vmul.f32 0.25, %v868_v1  ;;  %v1038_v33 = vmul.f32 0.25, %v866_v4 }
 0x12e   : > { %v963_v15 = vsel %vm936_vm1, %v4798_v41, %v4797_v51  ;;  %v1037_v19 = vmul.f32 0.25, %v876_v63  ;;  %v1099_v9 = vmul.f32 0.25, %v965_v25  ;;  %v1100_v0 = vmul.f32 0.25, %v972_v22 }
 0x12f   : > { %v1101_v55 = vmul.f32 0.25, %v963_v15  ;;  %v4800_v59 = vrot.slane %v3129_v43, 7  ;;  %v1068_v61 = vadd.f32 %v1036_v60, %v1004_v48  ;;  %v1070_v14 = vadd.f32 %v1038_v33, %v3331_v32 }
 0x130   : > { %v1069_v51 = vadd.f32 %v1037_v19, %v3162_v39  ;;  %v1131_v6 = vadd.f32 %v1099_v9, %v3152_v26  ;;  %v1132_v63 = vadd.f32 %v1100_v0, %v1004_v48  ;;  %v4802_v15 = vrot.slane %v3139_v10, 7 }
 0x131   : > { %v1222_v41 = vsel %vm839_vm0, %v1162_v2, %v4800_v59  ;;  %v1133_v4 = vadd.f32 %v1101_v55, %v3162_v39  ;;  %v4801_v1 = vmov %v4800_v59  ;;  %v1258_v9 = vrot.slane %v769_v20, 1 }
 0x132   : > { %v1221_v56 = vsel %vm839_vm0, %v4801_v1, %v4759_v58  ;;  %v1223_v19 = vsel %vm839_vm0, %v4802_v15, %v1162_v2  ;;  %v1227_v26 = vsel %vm803_vm3, %v3129_v43, %v1222_v41  ;;  %v4758_v33 = vrot.slane %v3316_v52, 1 }
 0x133   : > { %v1354_v39 = vmul.f32 0.75, %v769_v20  ;;  %v3394_v55 = vmul.f32 0.75, %v3316_v52  ;;  %v1386_v48 = vmul.f32 0.25, %v1223_v19  ;;  %v1387_v25 = vmul.f32 0.25, %v1227_v26 }
 0x134   : > { %v1388_v22 = vmul.f32 0.25, %v1221_v56  ;;  %v4803_v60 = vrot.slane %v3129_v43, 1  ;;  %v4805_v41 = vrot.slane %v3139_v10, 1  ;;  %v2574_v15 = vpack.c.bf16 %v1068_v61, %v1068_v61 }
 0x135   : > { %v1418_v19 = vadd.f32 %v1386_v48, %v1354_v39  ;;  %v1419_v26 = vadd.f32 %v1387_v25, %v3189_v36  ;;  %v2575_v58 = vpack.c.bf16 %v1069_v51, %v1069_v51  ;;  %v2576_v61 = vpack.c.bf16 %v1070_v14, %v1070_v14 }
 0x136   : > { %v1317_v2 = vsel %vm936_vm1, %v4803_v60, %v4758_v33  ;;  %v4804_v0 = vmov %v4803_v60  ;;  %v1319_v1 = vsel %vm936_vm1, %v4805_v41, %v1258_v9  ;;  %v1420_v60 = vadd.f32 %v1388_v22, %v3394_v55  ;;  %1645 = vst.msk [vmem:[%s3092_s19 + $0xc] sm:$0xf] %vm1641_vm2, %v2574_v15 }
 0x137   : > { %v1318_v59 = vsel %vm936_vm1, %v1258_v9, %v4804_v0  ;;  %v1449_v43 = vmul.f32 0.25, %v1319_v1  ;;  %v1451_v33 = vmul.f32 0.25, %v1317_v2  ;;  %v2605_v9 = vpack.c.bf16 %v1131_v6, %v1131_v6  ;;  %1646 = vst.msk [vmem:[%s3092_s19 + $0x10] sm:$0xf] %vm1641_vm2, %v2575_v58  ;;  %1647 = vst.msk [vmem:[%s3092_s19 + $0x14] sm:$0xf] %vm1641_vm2, %v2576_v61 }
 0x138   : > { %v1322_v56 = vsel %vm806_vm4, %v769_v20, %v1318_v59  ;;  %v2606_v41 = vpack.c.bf16 %v1132_v63, %v1132_v63  ;;  %v2607_v20 = vpack.c.bf16 %v1133_v4, %v1133_v4  ;;  %v2636_v22 = vpack.c.bf16 %v1418_v19, %v1418_v19  ;;  %v3434_v6 = vpop.f32.mrb[17].mxu0 }
 0x139   : > { %v1450_v0 = vmul.f32 0.25, %v1322_v56  ;;  %v1481_v48 = vadd.f32 %v1449_v43, %v3186_v62  ;;  %v1483_v59 = vadd.f32 %v1451_v33, %v3189_v36  ;;  %2408 = vst.msk [vmem:[%s3092_s19 + $0x88] sm:$0xf] %vm1641_vm2, %v2605_v9  ;;  %v2637_v51 = vpack.c.bf16 %v1419_v26, %v1419_v26 }
 0x13a   : > { %2409 = vst.msk [vmem:[%s3092_s19 + $0x8c] sm:$0xf] %vm1641_vm2, %v2606_v41  ;;  %2410 = vst.msk [vmem:[%s3092_s19 + $0x90] sm:$0xf] %vm1641_vm2, %v2607_v20  ;;  %v2638_v14 = vpack.c.bf16 %v1420_v60, %v1420_v60  ;;  %v789_v36 = vadd.f32 %v3303_v49, %v2995_v50  ;;  %v3432_v58 = vadd.f32 %v3289_v53, %v3299_v46  ;;  %v832_v50 = vrot.slane %v3324_v42, 7 }
 0x13b   : > { %v1482_v25 = vadd.f32 %v1450_v0, %v1354_v39  ;;  %2471 = vst.msk [vmem:[%s3092_s19 + $0x104] sm:$0xf] %vm1641_vm2, %v2636_v22  ;;  %v2667_v63 = vpack.c.bf16 %v1481_v48, %v1481_v48  ;;  %v2669_v33 = vpack.c.bf16 %v1483_v59, %v1483_v59  ;;  %v830_v39 = vrot.slane %v3320_v21, 7  ;;  %2472 = vst.msk [vmem:[%s3092_s19 + $0x108] sm:$0xf] %vm1641_vm2, %v2637_v51 }
 0x13c   : > { %2473 = vst.msk [vmem:[%s3092_s19 + $0x10c] sm:$0xf] %vm1641_vm2, %v2638_v14  ;;  %v927_v49 = vrot.slane %v3320_v21, 1  ;;  %v929_v46 = vrot.slane %v3324_v42, 1  ;;  %v1024_v2 = vmul.f32 0.75, %v3320_v21  ;;  %v4806_v1 = vrot.slane %v3218_v34, 7 }
 0x13d   : > { %v2668_v4 = vpack.c.bf16 %v1482_v25, %v1482_v25  ;;  %2534 = vst.msk [vmem:[%s3092_s19 + $0x180] sm:$0xf] %vm1641_vm2, %v2667_v63  ;;  %2536 = vst.msk [vmem:[%s3092_s19 + $0x188] sm:$0xf] %vm1641_vm2, %v2669_v33  ;;  %v4807_v56 = vrot.slane %v3193_v54, 7  ;;  %v3462_v26 = vmul.f32 0.75, %v3324_v42 }
 0x13e   : > { %v847_v15 = vsel %vm839_vm0, %v830_v39, %v4806_v1  ;;  %v1182_v60 = vrot.slane %v789_v36, 7  ;;  %v4808_v43 = vmov %v4806_v1  ;;  %v4809_v9 = vrot.slane %v3218_v34, 1  ;;  %v3490_v63 = vpop.f32.mrb[18].mxu0 }
 0x13f   : > { %2535 = vst.msk [vmem:[%s3092_s19 + $0x184] sm:$0xf] %vm1641_vm2, %v2668_v4  ;;  %v848_v19 = vsel %vm839_vm0, %v4807_v56, %v830_v39  ;;  %v846_v0 = vsel %vm839_vm0, %v4808_v43, %v832_v50  ;;  %v896_v61 = vsel %vm803_vm3, %v3218_v34, %v847_v15  ;;  %v4811_v25 = vrot.slane %v3193_v54, 1 }
 0x140   : > { %v943_v41 = vsel %vm936_vm1, %v4809_v9, %v929_v46  ;;  %v4810_v20 = vmov %v4809_v9  ;;  %v1056_v51 = vmul.f32 0.25, %v848_v19  ;;  %v1057_v14 = vmul.f32 0.25, %v896_v61 }
 0x141   : > { %v944_v48 = vsel %vm936_vm1, %v927_v49, %v4810_v20  ;;  %v945_v59 = vsel %vm936_vm1, %v4811_v25, %v927_v49  ;;  %v1058_v4 = vmul.f32 0.25, %v846_v0  ;;  %v1121_v34 = vmul.f32 0.25, %v943_v41 }
 0x142   : > { %v992_v22 = vsel %vm806_vm4, %v3320_v21, %v944_v48  ;;  %v1119_v33 = vmul.f32 0.25, %v945_v59  ;;  %v1088_v1 = vadd.f32 %v1056_v51, %v1024_v2  ;;  %v1089_v15 = vadd.f32 %v1057_v14, %v3252_v24 }
 0x143   : > { %v1120_v39 = vmul.f32 0.25, %v992_v22  ;;  %v1184_v54 = vrot.slane %v3432_v58, 7  ;;  %v4812_v56 = vrot.slane %v3200_v30, 7  ;;  %v1090_v21 = vadd.f32 %v1058_v4, %v3462_v26 }
 0x144   : > { %v1151_v19 = vadd.f32 %v1119_v33, %v3230_v17  ;;  %v1153_v0 = vadd.f32 %v1121_v34, %v3252_v24  ;;  %v4814_v41 = vrot.slane %v3221_v23, 7  ;;  %v1278_v17 = vrot.slane %v789_v36, 1 }
 0x145   : > { %v1202_v49 = vsel %vm839_vm0, %v1182_v60, %v4812_v56  ;;  %v1152_v43 = vadd.f32 %v1120_v39, %v1024_v2  ;;  %v4813_v61 = vmov %v4812_v56  ;;  %v1280_v2 = vrot.slane %v3432_v58, 1 }
 0x146   : > { %v1201_v9 = vsel %vm839_vm0, %v4813_v61, %v1184_v54  ;;  %v1203_v20 = vsel %vm839_vm0, %v4814_v41, %v1182_v60  ;;  %v1247_v48 = vsel %vm803_vm3, %v3200_v30, %v1202_v49  ;;  %v1374_v24 = vmul.f32 0.75, %v789_v36 }
 0x147   : > { %v3516_v25 = vmul.f32 0.75, %v3432_v58  ;;  %v1406_v59 = vmul.f32 0.25, %v1203_v20  ;;  %v4815_v22 = vrot.slane %v3200_v30, 1  ;;  %v4816_v14 = vrot.slane %v3221_v23, 1 }
 0x148   : > { %v1407_v4 = vmul.f32 0.25, %v1247_v48  ;;  %v1408_v33 = vmul.f32 0.25, %v1201_v9  ;;  %v3536_v48 = vpop.f32.mrb[19].mxu0 }
 0x149   : > { %v1298_v51 = vsel %vm936_vm1, %v1278_v17, %v4815_v22  ;;  %v1299_v60 = vsel %vm936_vm1, %v4816_v14, %v1278_v17  ;;  %v4817_v39 = vmov %v4815_v22  ;;  %v1438_v49 = vadd.f32 %v1406_v59, %v1374_v24 }
 0x14a   : > { %v1297_v34 = vsel %vm936_vm1, %v4817_v39, %v1280_v2  ;;  %v1342_v56 = vsel %vm806_vm4, %v789_v36, %v1298_v51  ;;  %v1469_v61 = vmul.f32 0.25, %v1299_v60  ;;  %v1439_v23 = vadd.f32 %v1407_v4, %v3286_v5 }
 0x14b   : > { %v1440_v41 = vadd.f32 %v1408_v33, %v3516_v25  ;;  %v1470_v9 = vmul.f32 0.25, %v1342_v56  ;;  %v1471_v20 = vmul.f32 0.25, %v1297_v34  ;;  %v2594_v17 = vpack.c.bf16 %v1088_v1, %v1088_v1 }
 0x14c   : > { %v1501_v30 = vadd.f32 %v1469_v61, %v3274_v38  ;;  %v2595_v22 = vpack.c.bf16 %v1089_v15, %v1089_v15  ;;  %v2596_v36 = vpack.c.bf16 %v1090_v21, %v1090_v21  ;;  %v2625_v14 = vpack.c.bf16 %v1151_v19, %v1151_v19 }
 0x14d   : > { %v1502_v51 = vadd.f32 %v1470_v9, %v1374_v24  ;;  %v1503_v59 = vadd.f32 %v1471_v20, %v3286_v5  ;;  %v2626_v60 = vpack.c.bf16 %v1152_v43, %v1152_v43  ;;  %1665 = vst.msk [vmem:[%s3092_s19 + $0x5c] sm:$0xf] %vm1641_vm2, %v2594_v17  ;;  %v2627_v38 = vpack.c.bf16 %v1153_v0, %v1153_v0 }
 0x14e   : > { %1666 = vst.msk [vmem:[%s3092_s19 + $0x60] sm:$0xf] %vm1641_vm2, %v2595_v22  ;;  %1667 = vst.msk [vmem:[%s3092_s19 + $0x64] sm:$0xf] %vm1641_vm2, %v2596_v36  ;;  %v2656_v4 = vpack.c.bf16 %v1438_v49, %v1438_v49  ;;  %v2657_v1 = vpack.c.bf16 %v1439_v23, %v1439_v23  ;;  %v2658_v15 = vpack.c.bf16 %v1440_v41, %v1440_v41  ;;  %v3551_v43 = vmul.f32 0.75, %v3110_v29 }
 0x14f   : > { %2428 = vst.msk [vmem:[%s3092_s19 + $0xd8] sm:$0xf] %vm1641_vm2, %v2625_v14  ;;  %2429 = vst.msk [vmem:[%s3092_s19 + $0xdc] sm:$0xf] %vm1641_vm2, %v2626_v60  ;;  %v2687_v5 = vpack.c.bf16 %v1501_v30, %v1501_v30  ;;  %v2688_v21 = vpack.c.bf16 %v1502_v51, %v1502_v51  ;;  %v2689_v19 = vpack.c.bf16 %v1503_v59, %v1503_v59  ;;  %v3562_v0 = vmul.f32 0.25, %v3110_v29 }
 0x150   : > { %2430 = vst.msk [vmem:[%s3092_s19 + $0xe0] sm:$0xf] %vm1641_vm2, %v2627_v38  ;;  %2491 = vst.msk [vmem:[%s3092_s19 + $0x154] sm:$0xf] %vm1641_vm2, %v2656_v4  ;;  %v3565_v24 = vmul.f32 0.75, %v3112_v31  ;;  %v3568_v33 = vmul.f32 0.25, %v3112_v31 }
 0x151   : > { %2492 = vst.msk [vmem:[%s3092_s19 + $0x158] sm:$0xf] %vm1641_vm2, %v2657_v1  ;;  %2493 = vst.msk [vmem:[%s3092_s19 + $0x15c] sm:$0xf] %vm1641_vm2, %v2658_v15  ;;  %v674_v39 = vmul.f32 0.75, %v3121_v3  ;;  %v708_v34 = vmul.f32 0.25, %v3121_v3 }
 0x152   : > { %2554 = vst.msk [vmem:[%s3092_s19 + $0x1d0] sm:$0xf] %vm1641_vm2, %v2687_v5  ;;  %2555 = vst.msk [vmem:[%s3092_s19 + $0x1d4] sm:$0xf] %vm1641_vm2, %v2688_v21  ;;  %v694_v56 = vmul.f32 0.75, %v3123_v35  ;;  %v728_v29 = vmul.f32 0.25, %v3123_v35 }
 0x153   : > { %2556 = vst.msk [vmem:[%s3092_s19 + $0x1d8] sm:$0xf] %vm1641_vm2, %v2689_v19  ;;  %v3581_v49 = vmul.f32 0.75, %v3131_v44  ;;  %v3584_v31 = vadd.f32 %v3051_v12, %v674_v39  ;;  %v3587_v61 = vadd.f32 %v3562_v0, %v674_v39  ;;  %v3590_v23 = vmul.f32 0.25, %v3131_v44 }
 0x154   : > { %v3593_v41 = vmul.f32 0.75, %v3133_v8  ;;  %v3596_v3 = vadd.f32 %v708_v34, %v3551_v43  ;;  %v3599_v35 = vadd.f32 %v708_v34, %v3034_v7  ;;  %v3602_v9 = vadd.f32 %v3108_v16, %v694_v56 }
 0x155   : > { %v3605_v12 = vadd.f32 %v728_v29, %v3565_v24  ;;  %v813_v20 = vrot.slane %v3584_v31, 7  ;;  %v910_v44 = vrot.slane %v3584_v31, 1  ;;  %v3610_v30 = vmul.f32 0.75, %v3584_v31 }
 0x156   : > { %v1167_v17 = vrot.slane %v3587_v61, 7  ;;  %v815_v22 = vrot.slane %v3596_v3, 7  ;;  %v912_v7 = vrot.slane %v3596_v3, 1  ;;  %v3616_v36 = vmul.f32 0.75, %v3596_v3 }
 0x157   : > { %v1165_v16 = vrot.slane %v3599_v35, 7  ;;  %v4818_v51 = vrot.slane %v3308_v37, 7  ;;  %v4819_v14 = vrot.slane %v3308_v37, 1  ;;  %v4760_v38 = vrot.slane %v3599_v35, 1 }
 0x158   : > { %v4820_v5 = vrot.slane %v3316_v52, 7  ;;  %v3646_v19 = vmul.f32 0.75, %v3599_v35 }
 0x159   : > { %v865_v59 = vsel %vm839_vm0, %v4818_v51, %v813_v20  ;;  %v962_v60 = vsel %vm936_vm1, %v4819_v14, %v910_v44 }
 0x15a   : > { %v878_v1 = vsel %vm803_vm3, %v3584_v31, %v865_v59  ;;  %v974_v15 = vsel %vm806_vm4, %v3308_v37, %v962_v60  ;;  %v1220_v21 = vsel %vm839_vm0, %v4820_v5, %v1165_v16  ;;  %v4821_v37 = vrot.slane %v3316_v52, 1 }
 0x15b   : > { %v1039_v39 = vmul.f32 0.25, %v878_v1  ;;  %v1102_v34 = vmul.f32 0.25, %v974_v15  ;;  %v1229_v51 = vsel %vm803_vm3, %v3599_v35, %v1220_v21  ;;  %v3661_v60 = vmul.f32 0.75, %v3587_v61 }
 0x15c   : > { %v1316_v59 = vsel %vm936_vm1, %v4821_v37, %v4760_v38  ;;  %v1389_v1 = vmul.f32 0.25, %v1229_v51  ;;  %v3664_v15 = vadd.f32 %v728_v29, %v3053_v13  ;;  %v3669_v37 = vadd.f32 %v3568_v33, %v694_v56 }
 0x15d   : > { %v1324_v14 = vsel %vm806_vm4, %v3316_v52, %v1316_v59  ;;  %v1071_v5 = vadd.f32 %v1039_v39, %v3610_v30  ;;  %v1134_v21 = vadd.f32 %v1102_v34, %v3331_v32  ;;  %v4766_v52 = vrot.slane %v3602_v9, 7 }
 0x15e   : > { %v1452_v4 = vmul.f32 0.25, %v1324_v14  ;;  %v1421_v38 = vadd.f32 %v1389_v1, %v3646_v19  ;;  %v835_v59 = vrot.slane %v3605_v12, 7  ;;  %v4762_v13 = vrot.slane %v3602_v9, 1 }
 0x15f   : > { %v2577_v39 = vpack.c.bf16 %v1071_v5, %v1071_v5  ;;  %v2608_v51 = vpack.c.bf16 %v1134_v21, %v1134_v21  ;;  %v845_v56 = vsel %vm839_vm0, %v832_v50, %v4766_v52  ;;  %v3703_v1 = vmul.f32 0.75, %v3605_v12 }
 0x160   : > { %v1484_v29 = vadd.f32 %v1452_v4, %v3394_v55  ;;  %v2639_v34 = vpack.c.bf16 %v1421_v38, %v1421_v38  ;;  %v942_v55 = vsel %vm936_vm1, %v929_v46, %v4762_v13  ;;  %v3690_v4 = vmul.f32 0.75, %v3602_v9 }
 0x161   : > { %1648 = vst.msk [vmem:[%s3092_s19 + $0x18] sm:$0xf] %vm1641_vm2, %v2577_v39  ;;  %2411 = vst.msk [vmem:[%s3092_s19 + $0x94] sm:$0xf] %vm1641_vm2, %v2608_v51  ;;  %v898_v14 = vsel %vm803_vm3, %v3602_v9, %v845_v56  ;;  %v994_v50 = vsel %vm806_vm4, %v3324_v42, %v942_v55  ;;  %v4761_v21 = vrot.slane %v3664_v15, 7  ;;  %v3714_v56 = vmul.f32 0.75, %v3664_v15 }
 0x162   : > { %v2670_v38 = vpack.c.bf16 %v1484_v29, %v1484_v29  ;;  %2474 = vst.msk [vmem:[%s3092_s19 + $0x110] sm:$0xf] %vm1641_vm2, %v2639_v34  ;;  %v1059_v46 = vmul.f32 0.25, %v898_v14  ;;  %v1122_v5 = vmul.f32 0.25, %v994_v50  ;;  %v4765_v29 = vrot.slane %v3664_v15, 1 }
 0x163   : > { %v3717_v42 = vmul.f32 0.75, %v3669_v37  ;;  %v3728_v14 = vmul.f32 0.25, %v3133_v8 }
 0x164   : > { %2537 = vst.msk [vmem:[%s3092_s19 + $0x18c] sm:$0xf] %vm1641_vm2, %v2670_v38  ;;  %v1091_v34 = vadd.f32 %v1059_v46, %v3690_v4  ;;  %v1154_v55 = vadd.f32 %v1122_v5, %v3462_v26  ;;  %v1200_v38 = vsel %vm839_vm0, %v1184_v54, %v4761_v21  ;;  %v1296_v26 = vsel %vm936_vm1, %v1280_v2, %v4765_v29 }
 0x165   : > { %v1249_v50 = vsel %vm803_vm3, %v3664_v15, %v1200_v38  ;;  %v675_v46 = vmul.f32 0.75, %v3141_v11  ;;  %v709_v5 = vmul.f32 0.25, %v3141_v11  ;;  %v1344_v8 = vsel %vm806_vm4, %v3432_v58, %v1296_v26 }
 0x166   : > { %v1409_v54 = vmul.f32 0.25, %v1249_v50  ;;  %v2597_v51 = vpack.c.bf16 %v1091_v34, %v1091_v34  ;;  %v2628_v21 = vpack.c.bf16 %v1154_v55, %v1154_v55  ;;  %v1472_v39 = vmul.f32 0.25, %v1344_v8 }
 0x167   : > { %v739_v38 = vadd.f32 %v3206_v47, %v675_v46  ;;  %v3746_v13 = vadd.f32 %v709_v5, %v3581_v49  ;;  %v773_v32 = vadd.f32 %v709_v5, %v3203_v57  ;;  %v3755_v11 = vadd.f32 %v3590_v23, %v675_v46 }
 0x168   : > { %v1441_v2 = vadd.f32 %v1409_v54, %v3714_v56  ;;  %1668 = vst.msk [vmem:[%s3092_s19 + $0x68] sm:$0xf] %vm1641_vm2, %v2597_v51  ;;  %2431 = vst.msk [vmem:[%s3092_s19 + $0xe4] sm:$0xf] %vm1641_vm2, %v2628_v21  ;;  %v3758_v58 = vmul.f32 0.75, %v3143_v40  ;;  %v3761_v47 = vmul.f32 0.25, %v3143_v40  ;;  %v1504_v34 = vadd.f32 %v1472_v39, %v3516_v25 }
 0x169   : > { %v814_v55 = vrot.slane %v739_v38, 7  ;;  %v4764_v57 = vrot.slane %v3746_v13, 7  ;;  %v911_v50 = vrot.slane %v739_v38, 1  ;;  %v4763_v21 = vrot.slane %v3746_v13, 1 }
 0x16a   : > { %v2659_v51 = vpack.c.bf16 %v1441_v2, %v1441_v2  ;;  %v1008_v26 = vmul.f32 0.75, %v739_v38  ;;  %v3767_v46 = vmul.f32 0.75, %v3746_v13  ;;  %v2690_v5 = vpack.c.bf16 %v1504_v34, %v1504_v34 }
 0x16b   : > { %v862_v40 = vsel %vm839_vm0, %v815_v22, %v4764_v57  ;;  %v863_v25 = vsel %vm839_vm0, %v814_v55, %v815_v22  ;;  %v864_v39 = vsel %vm839_vm0, %v813_v20, %v814_v55  ;;  %v959_v54 = vsel %vm936_vm1, %v912_v7, %v4763_v21 }
 0x16c   : > { %2494 = vst.msk [vmem:[%s3092_s19 + $0x160] sm:$0xf] %vm1641_vm2, %v2659_v51  ;;  %v880_v8 = vsel %vm803_vm3, %v3596_v3, %v863_v25  ;;  %v960_v22 = vsel %vm936_vm1, %v911_v50, %v912_v7  ;;  %v961_v20 = vsel %vm936_vm1, %v910_v44, %v911_v50  ;;  %2557 = vst.msk [vmem:[%s3092_s19 + $0x1dc] sm:$0xf] %vm1641_vm2, %v2690_v5  ;;  %v1040_v34 = vmul.f32 0.25, %v864_v39 }
 0x16d   : > { %v976_v2 = vsel %vm806_vm4, %v739_v38, %v960_v22  ;;  %v1041_v55 = vmul.f32 0.25, %v880_v8  ;;  %v1042_v51 = vmul.f32 0.25, %v862_v40  ;;  %v1103_v25 = vmul.f32 0.25, %v961_v20 }
 0x16e   : > { %v1104_v21 = vmul.f32 0.25, %v976_v2  ;;  %v1105_v57 = vmul.f32 0.25, %v959_v54  ;;  %v1166_v3 = vrot.slane %v773_v32, 7  ;;  %v1072_v29 = vadd.f32 %v1040_v34, %v1008_v26 }
 0x16f   : > { %v1073_v7 = vadd.f32 %v1041_v55, %v3616_v36  ;;  %v1074_v31 = vadd.f32 %v1042_v51, %v3767_v46  ;;  %v1168_v52 = vrot.slane %v3755_v11, 7  ;;  %v1135_v44 = vadd.f32 %v1103_v25, %v3610_v30 }
 0x170   : > { %v1136_v50 = vadd.f32 %v1104_v21, %v1008_v26  ;;  %v1137_v5 = vadd.f32 %v1105_v57, %v3616_v36  ;;  %v1218_v38 = vsel %vm839_vm0, %v1166_v3, %v1167_v17  ;;  %v1219_v30 = vsel %vm839_vm0, %v1165_v16, %v1166_v3 }
 0x171   : > { %v1217_v40 = vsel %vm839_vm0, %v1167_v17, %v1168_v52  ;;  %v1231_v36 = vsel %vm803_vm3, %v3587_v61, %v1218_v38  ;;  %v1262_v57 = vrot.slane %v773_v32, 1  ;;  %v1264_v21 = vrot.slane %v3755_v11, 1 }
 0x172   : > { %v1358_v26 = vmul.f32 0.75, %v773_v32  ;;  %v3830_v39 = vmul.f32 0.75, %v3755_v11  ;;  %v1390_v8 = vmul.f32 0.25, %v1219_v30  ;;  %v4822_v54 = vrot.slane %v3587_v61, 1 }
 0x173   : > { %v4823_v22 = vrot.slane %v3599_v35, 1  ;;  %v1391_v20 = vmul.f32 0.25, %v1231_v36  ;;  %v1392_v2 = vmul.f32 0.25, %v1217_v40  ;;  %v2578_v36 = vpack.c.bf16 %v1072_v29, %v1072_v29 }
 0x174   : > { %v1314_v17 = vsel %vm936_vm1, %v1262_v57, %v4822_v54  ;;  %v4824_v34 = vmov %v4822_v54  ;;  %v1422_v25 = vadd.f32 %v1390_v8, %v1358_v26  ;;  %v2580_v54 = vpack.c.bf16 %v1074_v31, %v1074_v31 }
 0x175   : > { %v1315_v16 = vsel %vm936_vm1, %v4823_v22, %v1262_v57  ;;  %v1313_v55 = vsel %vm936_vm1, %v4824_v34, %v1264_v21  ;;  %v1326_v51 = vsel %vm806_vm4, %v773_v32, %v1314_v17  ;;  %v1423_v3 = vadd.f32 %v1391_v20, %v3661_v60  ;;  %1649 = vst.msk [vmem:[%s3092_s19 + $0x1c] sm:$0xf] %vm1641_vm2, %v2578_v36 }
 0x176   : > { %v1453_v35 = vmul.f32 0.25, %v1315_v16  ;;  %v1424_v38 = vadd.f32 %v1392_v2, %v3830_v39  ;;  %v1454_v40 = vmul.f32 0.25, %v1326_v51  ;;  %v1455_v30 = vmul.f32 0.25, %v1313_v55  ;;  %1651 = vst.msk [vmem:[%s3092_s19 + $0x24] sm:$0xf] %vm1641_vm2, %v2580_v54 }
 0x177   : > { %v2579_v57 = vpack.c.bf16 %v1073_v7, %v1073_v7  ;;  %v2609_v8 = vpack.c.bf16 %v1135_v44, %v1135_v44  ;;  %v2610_v17 = vpack.c.bf16 %v1136_v50, %v1136_v50  ;;  %v2640_v16 = vpack.c.bf16 %v1422_v25, %v1422_v25 }
 0x178   : > { %v1485_v61 = vadd.f32 %v1453_v35, %v3646_v19  ;;  %v1486_v22 = vadd.f32 %v1454_v40, %v1358_v26  ;;  %v1487_v32 = vadd.f32 %v1455_v30, %v3661_v60  ;;  %v2611_v19 = vpack.c.bf16 %v1137_v5, %v1137_v5 }
 0x179   : > { %1650 = vst.msk [vmem:[%s3092_s19 + $0x20] sm:$0xf] %vm1641_vm2, %v2579_v57  ;;  %v2641_v29 = vpack.c.bf16 %v1423_v3, %v1423_v3  ;;  %v2642_v7 = vpack.c.bf16 %v1424_v38, %v1424_v38  ;;  %2412 = vst.msk [vmem:[%s3092_s19 + $0x98] sm:$0xf] %vm1641_vm2, %v2609_v8  ;;  %v759_v50 = vadd.f32 %v3289_v53, %v3758_v58  ;;  %v4825_v53 = vld [vmem:[#allocation12_spill] sm:$0xff]  ;;  %v4826_v38 = vrot.slane %v3602_v9, 7 }
 0x17a   : > { %2413 = vst.msk [vmem:[%s3092_s19 + $0x9c] sm:$0xf] %vm1641_vm2, %v2610_v17  ;;  %v2671_v60 = vpack.c.bf16 %v1485_v61, %v1485_v61  ;;  %v2672_v31 = vpack.c.bf16 %v1486_v22, %v1486_v22  ;;  %v2673_v44 = vpack.c.bf16 %v1487_v32, %v1487_v32  ;;  %2414 = vst.msk [vmem:[%s3092_s19 + $0xa0] sm:$0xf] %vm1641_vm2, %v2611_v19  ;;  %v3883_v2 = vmul.f32 0.75, %v4825_v53 }
 0x17b   : > { %2475 = vst.msk [vmem:[%s3092_s19 + $0x114] sm:$0xf] %vm1641_vm2, %v2640_v16  ;;  %2476 = vst.msk [vmem:[%s3092_s19 + $0x118] sm:$0xf] %vm1641_vm2, %v2641_v29  ;;  %v3874_v5 = vadd.f32 %v3761_v47, %v3593_v41  ;;  %v793_v26 = vadd.f32 %v3761_v47, %v3209_v28  ;;  %v3880_v20 = vadd.f32 %v3728_v14, %v3758_v58  ;;  %v834_v34 = vrot.slane %v759_v50, 7 }
 0x17c   : > { %2477 = vst.msk [vmem:[%s3092_s19 + $0x11c] sm:$0xf] %vm1641_vm2, %v2642_v7  ;;  %2538 = vst.msk [vmem:[%s3092_s19 + $0x190] sm:$0xf] %vm1641_vm2, %v2671_v60  ;;  %v931_v55 = vrot.slane %v759_v50, 1  ;;  %v1028_v51 = vmul.f32 0.75, %v759_v50 }
 0x17d   : > { %2539 = vst.msk [vmem:[%s3092_s19 + $0x194] sm:$0xf] %vm1641_vm2, %v2672_v31  ;;  %2540 = vst.msk [vmem:[%s3092_s19 + $0x198] sm:$0xf] %vm1641_vm2, %v2673_v44  ;;  %v3892_v25 = vmul.f32 0.25, %v4825_v53  ;;  %v836_v28 = vrot.slane %v3874_v5, 7  ;;  %v843_v3 = vsel %vm839_vm0, %v834_v34, %v835_v59  ;;  %v844_v40 = vsel %vm839_vm0, %v4826_v38, %v834_v34 }
 0x17e   : > { %v933_v58 = vrot.slane %v3874_v5, 1  ;;  %v3897_v47 = vmul.f32 0.75, %v3874_v5  ;;  %v1186_v35 = vrot.slane %v793_v26, 7  ;;  %v4827_v30 = vrot.slane %v3605_v12, 1 }
 0x17f   : > { %v4828_v36 = vrot.slane %v3602_v9, 1  ;;  %v842_v54 = vsel %vm839_vm0, %v835_v59, %v836_v28  ;;  %v900_v22 = vsel %vm803_vm3, %v3605_v12, %v843_v3  ;;  %v1060_v17 = vmul.f32 0.25, %v844_v40 }
 0x180   : > { %v940_v61 = vsel %vm936_vm1, %v931_v55, %v4827_v30  ;;  %v4829_v32 = vmov %v4827_v30  ;;  %v1061_v19 = vmul.f32 0.25, %v900_v22  ;;  %v1062_v16 = vmul.f32 0.25, %v842_v54 }
 0x181   : > { %v941_v57 = vsel %vm936_vm1, %v4828_v36, %v931_v55  ;;  %v939_v9 = vsel %vm936_vm1, %v4829_v32, %v933_v58  ;;  %v996_v8 = vsel %vm806_vm4, %v759_v50, %v940_v61  ;;  %v1188_v60 = vrot.slane %v3880_v20, 7 }
 0x182   : > { %v1123_v29 = vmul.f32 0.25, %v941_v57  ;;  %v1124_v7 = vmul.f32 0.25, %v996_v8  ;;  %v1125_v59 = vmul.f32 0.25, %v939_v9  ;;  %v4830_v31 = vrot.slane %v3669_v37, 7 }
 0x183   : > { %v1092_v12 = vadd.f32 %v1060_v17, %v1028_v51  ;;  %v1093_v53 = vadd.f32 %v1061_v19, %v3703_v1  ;;  %v1094_v34 = vadd.f32 %v1062_v16, %v3897_v47  ;;  %v4832_v30 = vrot.slane %v3664_v15, 7 }
 0x184   : > { %v1198_v44 = vsel %vm839_vm0, %v1186_v35, %v4830_v31  ;;  %v1155_v50 = vadd.f32 %v1123_v29, %v3690_v4  ;;  %v1156_v55 = vadd.f32 %v1124_v7, %v1028_v51  ;;  %v1157_v3 = vadd.f32 %v1125_v59, %v3703_v1 }
 0x185   : > { %v4831_v38 = vmov %v4830_v31  ;;  %v1199_v61 = vsel %vm839_vm0, %v4832_v30, %v1186_v35  ;;  %v1251_v36 = vsel %vm803_vm3, %v3669_v37, %v1198_v44  ;;  %v1282_v4 = vrot.slane %v793_v26, 1 }
 0x186   : > { %v1197_v40 = vsel %vm839_vm0, %v4831_v38, %v1188_v60  ;;  %v1284_v51 = vrot.slane %v3880_v20, 1  ;;  %v1378_v1 = vmul.f32 0.75, %v793_v26  ;;  %v3956_v57 = vmul.f32 0.75, %v3880_v20 }
 0x187   : > { %v1410_v54 = vmul.f32 0.25, %v1199_v61  ;;  %v1411_v22 = vmul.f32 0.25, %v1251_v36  ;;  %v1412_v32 = vmul.f32 0.25, %v1197_v40  ;;  %v4833_v9 = vrot.slane %v3669_v37, 1 }
 0x188   : > { %v4835_v19 = vrot.slane %v3664_v15, 1  ;;  %v2598_v29 = vpack.c.bf16 %v1092_v12, %v1092_v12  ;;  %v2599_v40 = vpack.c.bf16 %v1093_v53, %v1093_v53  ;;  %v2600_v12 = vpack.c.bf16 %v1094_v34, %v1094_v34  ;;  %v4836_v34 = vld [vmem:[#allocation13_spill] sm:$0xff] }
 0x189   : > { %v1293_v35 = vsel %vm936_vm1, %v4833_v9, %v1284_v51  ;;  %v4834_v8 = vmov %v4833_v9  ;;  %v1442_v59 = vadd.f32 %v1410_v54, %v1378_v1  ;;  %v1443_v31 = vadd.f32 %v1411_v22, %v3717_v42 }
 0x18a   : > { %v1294_v17 = vsel %vm936_vm1, %v1282_v4, %v4834_v8  ;;  %v1295_v16 = vsel %vm936_vm1, %v4835_v19, %v1282_v4  ;;  %v1444_v44 = vadd.f32 %v1412_v32, %v3956_v57  ;;  %v1475_v15 = vmul.f32 0.25, %v1293_v35  ;;  %1669 = vst.msk [vmem:[%s3092_s19 + $0x6c] sm:$0xf] %vm1641_vm2, %v2598_v29  ;;  %1670 = vst.msk [vmem:[%s3092_s19 + $0x70] sm:$0xf] %vm1641_vm2, %v2599_v40 }
 0x18b   : > { %v1346_v7 = vsel %vm806_vm4, %v793_v26, %v1294_v17  ;;  %v1473_v37 = vmul.f32 0.25, %v1295_v16  ;;  %v2629_v30 = vpack.c.bf16 %v1155_v50, %v1155_v50  ;;  %v2630_v26 = vpack.c.bf16 %v1156_v55, %v1156_v55  ;;  %1671 = vst.msk [vmem:[%s3092_s19 + $0x74] sm:$0xf] %vm1641_vm2, %v2600_v12  ;;  %v4837_v50 = vld [vmem:[#allocation14_spill] sm:$0xff]  ;;  %v4838_v17 = vld [vmem:[#allocation15_spill] sm:$0xff] }
 0x18c   : > { %v1474_v38 = vmul.f32 0.25, %v1346_v7  ;;  %v2631_v61 = vpack.c.bf16 %v1157_v3, %v1157_v3  ;;  %v1507_v54 = vadd.f32 %v1475_v15, %v3717_v42  ;;  %v2660_v22 = vpack.c.bf16 %v1442_v59, %v1442_v59 }
 0x18d   : > { %v1505_v36 = vadd.f32 %v1473_v37, %v3714_v56  ;;  %2432 = vst.msk [vmem:[%s3092_s19 + $0xe8] sm:$0xf] %vm1641_vm2, %v2629_v30  ;;  %2433 = vst.msk [vmem:[%s3092_s19 + $0xec] sm:$0xf] %vm1641_vm2, %v2630_v26  ;;  %v2661_v53 = vpack.c.bf16 %v1443_v31, %v1443_v31  ;;  %v2662_v56 = vpack.c.bf16 %v1444_v44, %v1444_v44  ;;  %v766_v42 = vmul.f32 0.25, %v4836_v34 }
 0x18e   : > { %v1506_v4 = vadd.f32 %v1474_v38, %v1378_v1  ;;  %2434 = vst.msk [vmem:[%s3092_s19 + $0xf0] sm:$0xf] %vm1641_vm2, %v2631_v61  ;;  %v678_v55 = vmul.f32 0.75, %v4837_v50  ;;  %2495 = vst.msk [vmem:[%s3092_s19 + $0x164] sm:$0xf] %vm1641_vm2, %v2660_v22  ;;  %v2693_v32 = vpack.c.bf16 %v1507_v54, %v1507_v54  ;;  %v712_v9 = vmul.f32 0.25, %v4837_v50 }
 0x18f   : > { %v2691_v3 = vpack.c.bf16 %v1505_v36, %v1505_v36  ;;  %2496 = vst.msk [vmem:[%s3092_s19 + $0x168] sm:$0xf] %vm1641_vm2, %v2661_v53  ;;  %2497 = vst.msk [vmem:[%s3092_s19 + $0x16c] sm:$0xf] %vm1641_vm2, %v2662_v56  ;;  %v698_v19 = vmul.f32 0.75, %v4838_v17  ;;  %v764_v16 = vmul.f32 0.25, %v4838_v17 }
 0x190   : > { %v2692_v1 = vpack.c.bf16 %v1506_v4, %v1506_v4  ;;  %v4000_v35 = vadd.f32 %v3562_v0, %v678_v55  ;;  %v4003_v8 = vadd.f32 %v3892_v25, %v678_v55  ;;  %2560 = vst.msk [vmem:[%s3092_s19 + $0x1e8] sm:$0xf] %vm1641_vm2, %v2693_v32  ;;  %v4014_v29 = vadd.f32 %v712_v9, %v3883_v2  ;;  %v4839_v0 = vld [vmem:[#allocation16_spill] sm:$0xff] }
 0x191   : > { %2558 = vst.msk [vmem:[%s3092_s19 + $0x1e0] sm:$0xf] %vm1641_vm2, %v2691_v3  ;;  %v4017_v7 = vadd.f32 %v712_v9, %v3551_v43  ;;  %v4020_v59 = vmul.f32 0.75, %v4839_v0  ;;  %v4023_v31 = vmul.f32 0.25, %v4839_v0  ;;  %v4840_v26 = vrot.slane %v3746_v13, 7 }
 0x192   : > { %2559 = vst.msk [vmem:[%s3092_s19 + $0x1e4] sm:$0xf] %vm1641_vm2, %v2692_v1  ;;  %v817_v44 = vrot.slane %v4000_v35, 7  ;;  %v914_v37 = vrot.slane %v4000_v35, 1  ;;  %v4028_v38 = vmul.f32 0.75, %v4000_v35  ;;  %v1171_v15 = vrot.slane %v4003_v8, 7 }
 0x193   : > { %v819_v40 = vrot.slane %v4014_v29, 7  ;;  %v916_v43 = vrot.slane %v4014_v29, 1  ;;  %v4034_v12 = vmul.f32 0.75, %v4014_v29  ;;  %v1169_v30 = vrot.slane %v4017_v7, 7 }
 0x194   : > { %v861_v61 = vsel %vm839_vm0, %v4840_v26, %v817_v44  ;;  %v4841_v36 = vrot.slane %v3746_v13, 1  ;;  %v1265_v54 = vrot.slane %v4017_v7, 1  ;;  %v1267_v22 = vrot.slane %v4003_v8, 1 }
 0x195   : > { %v882_v53 = vsel %vm803_vm3, %v4000_v35, %v861_v61  ;;  %v1216_v34 = vsel %vm839_vm0, %v1168_v52, %v1169_v30  ;;  %v4064_v50 = vmul.f32 0.75, %v4017_v7  ;;  %v4079_v32 = vmul.f32 0.75, %v4003_v8 }
 0x196   : > { %v958_v4 = vsel %vm936_vm1, %v4841_v36, %v914_v37  ;;  %v1043_v55 = vmul.f32 0.25, %v882_v53  ;;  %v1233_v1 = vsel %vm803_vm3, %v4017_v7, %v1216_v34  ;;  %v4082_v17 = vadd.f32 %v3568_v33, %v698_v19 }
 0x197   : > { %v978_v56 = vsel %vm806_vm4, %v3746_v13, %v958_v4  ;;  %v1312_v13 = vsel %vm936_vm1, %v1264_v21, %v1265_v54  ;;  %v1393_v9 = vmul.f32 0.25, %v1233_v1  ;;  %v4087_v21 = vadd.f32 %v764_v16, %v3565_v24 }
 0x198   : > { %v1106_v3 = vmul.f32 0.25, %v978_v56  ;;  %v1328_v52 = vsel %vm806_vm4, %v3755_v11, %v1312_v13  ;;  %v1075_v0 = vadd.f32 %v1043_v55, %v4028_v38  ;;  %v4090_v11 = vadd.f32 %v766_v42, %v698_v19 }
 0x199   : > { %v1456_v61 = vmul.f32 0.25, %v1328_v52  ;;  %v1425_v36 = vadd.f32 %v1393_v9, %v4064_v50  ;;  %v837_v4 = vrot.slane %v4082_v17, 7  ;;  %v934_v33 = vrot.slane %v4082_v17, 1 }
 0x19a   : > { %v1138_v26 = vadd.f32 %v1106_v3, %v3767_v46  ;;  %v2581_v56 = vpack.c.bf16 %v1075_v0, %v1075_v0  ;;  %v4096_v46 = vmul.f32 0.75, %v4082_v17  ;;  %v1189_v42 = vrot.slane %v4087_v21, 7 }
 0x19b   : > { %v1488_v53 = vadd.f32 %v1456_v61, %v3830_v39  ;;  %v2643_v55 = vpack.c.bf16 %v1425_v36, %v1425_v36  ;;  %v841_v24 = vsel %vm839_vm0, %v836_v28, %v837_v4  ;;  %v938_v39 = vsel %vm936_vm1, %v933_v58, %v934_v33 }
 0x19c   : > { %v2612_v34 = vpack.c.bf16 %v1138_v26, %v1138_v26  ;;  %1652 = vst.msk [vmem:[%s3092_s19 + $0x28] sm:$0xf] %vm1641_vm2, %v2581_v56  ;;  %v902_v16 = vsel %vm803_vm3, %v4082_v17, %v841_v24  ;;  %v998_v28 = vsel %vm806_vm4, %v3874_v5, %v938_v39  ;;  %v1191_v3 = vrot.slane %v4090_v11, 7  ;;  %v4843_v24 = vld [vmem:[#allocation18_spill] sm:$0xff] }
 0x19d   : > { %v2674_v19 = vpack.c.bf16 %v1488_v53, %v1488_v53  ;;  %2478 = vst.msk [vmem:[%s3092_s19 + $0x120] sm:$0xf] %vm1641_vm2, %v2643_v55  ;;  %v1063_v58 = vmul.f32 0.25, %v902_v16  ;;  %v1126_v1 = vmul.f32 0.25, %v998_v28  ;;  %v1196_v13 = vsel %vm839_vm0, %v1188_v60, %v1189_v42 }
 0x19e   : > { %2415 = vst.msk [vmem:[%s3092_s19 + $0xa4] sm:$0xf] %vm1641_vm2, %v2612_v34  ;;  %v4769_v52 = vrot.slane %v4087_v21, 1  ;;  %v1253_v5 = vsel %vm803_vm3, %v4087_v21, %v1196_v13  ;;  %v4138_v0 = vmul.f32 0.75, %v4087_v21  ;;  %v4141_v26 = vmul.f32 0.75, %v4090_v11  ;;  %v4842_v34 = vld [vmem:[#allocation17_spill] sm:$0xff] }
 0x19f   : > { %2541 = vst.msk [vmem:[%s3092_s19 + $0x19c] sm:$0xf] %vm1641_vm2, %v2674_v19  ;;  %v1095_v61 = vadd.f32 %v1063_v58, %v4096_v46  ;;  %v1158_v60 = vadd.f32 %v1126_v1, %v3897_v47  ;;  %v1413_v53 = vmul.f32 0.25, %v1253_v5  ;;  %v4155_v55 = vmul.f32 0.25, %v4842_v34 }
 0x1a0   : > { %v1292_v36 = vsel %vm936_vm1, %v1284_v51, %v4769_v52  ;;  %v679_v39 = vmul.f32 0.75, %v4843_v24  ;;  %v713_v47 = vmul.f32 0.25, %v4843_v24 }
 0x1a1   : > { %v1348_v56 = vsel %vm806_vm4, %v3880_v20, %v1292_v36  ;;  %v1445_v19 = vadd.f32 %v1413_v53, %v4138_v0  ;;  %v2601_v28 = vpack.c.bf16 %v1095_v61, %v1095_v61  ;;  %v2632_v58 = vpack.c.bf16 %v1158_v60, %v1158_v60  ;;  %v4844_v61 = vld [vmem:[#allocation19_spill] sm:$0xff] }
 0x1a2   : > { %v1476_v16 = vmul.f32 0.25, %v1348_v56  ;;  %v743_v51 = vadd.f32 %v3590_v23, %v679_v39  ;;  %v4162_v1 = vadd.f32 %v713_v47, %v4020_v59  ;;  %v777_v20 = vadd.f32 %v713_v47, %v3581_v49 }
 0x1a3   : > { %v4166_v13 = vadd.f32 %v4023_v31, %v679_v39  ;;  %1672 = vst.msk [vmem:[%s3092_s19 + $0x78] sm:$0xf] %vm1641_vm2, %v2601_v28  ;;  %2435 = vst.msk [vmem:[%s3092_s19 + $0xf4] sm:$0xf] %vm1641_vm2, %v2632_v58  ;;  %v2663_v36 = vpack.c.bf16 %v1445_v19, %v1445_v19  ;;  %v4174_v60 = vmul.f32 0.75, %v4844_v61  ;;  %v4177_v23 = vmul.f32 0.25, %v4844_v61 }
 0x1a4   : > { %v1508_v5 = vadd.f32 %v1476_v16, %v3956_v57  ;;  %v818_v53 = vrot.slane %v743_v51, 7  ;;  %v4768_v49 = vrot.slane %v4162_v1, 7  ;;  %v915_v56 = vrot.slane %v743_v51, 1 }
 0x1a5   : > { %v4767_v34 = vrot.slane %v4162_v1, 1  ;;  %2498 = vst.msk [vmem:[%s3092_s19 + $0x170] sm:$0xf] %vm1641_vm2, %v2663_v36  ;;  %v1012_v24 = vmul.f32 0.75, %v743_v51  ;;  %v4184_v39 = vmul.f32 0.75, %v4162_v1  ;;  %v1170_v47 = vrot.slane %v777_v20, 7 }
 0x1a6   : > { %v2694_v57 = vpack.c.bf16 %v1508_v5, %v1508_v5  ;;  %v858_v19 = vsel %vm839_vm0, %v819_v40, %v4768_v49  ;;  %v859_v16 = vsel %vm839_vm0, %v818_v53, %v819_v40  ;;  %v860_v28 = vsel %vm839_vm0, %v817_v44, %v818_v53 }
 0x1a7   : > { %v955_v58 = vsel %vm936_vm1, %v916_v43, %v4767_v34  ;;  %v884_v5 = vsel %vm803_vm3, %v4014_v29, %v859_v16  ;;  %v956_v40 = vsel %vm936_vm1, %v915_v56, %v916_v43  ;;  %v957_v44 = vsel %vm936_vm1, %v914_v37, %v915_v56 }
 0x1a8   : > { %2561 = vst.msk [vmem:[%s3092_s19 + $0x1ec] sm:$0xf] %vm1641_vm2, %v2694_v57  ;;  %v1044_v36 = vmul.f32 0.25, %v860_v28  ;;  %v980_v61 = vsel %vm806_vm4, %v743_v51, %v956_v40  ;;  %v1045_v53 = vmul.f32 0.25, %v884_v5  ;;  %v1046_v57 = vmul.f32 0.25, %v858_v19 }
 0x1a9   : > { %v1107_v34 = vmul.f32 0.25, %v957_v44  ;;  %v1108_v52 = vmul.f32 0.25, %v980_v61  ;;  %v1109_v16 = vmul.f32 0.25, %v955_v58  ;;  %v1172_v29 = vrot.slane %v4166_v13, 7 }
 0x1aa   : > { %v1076_v49 = vadd.f32 %v1044_v36, %v1012_v24  ;;  %v1077_v9 = vadd.f32 %v1045_v53, %v4034_v12  ;;  %v1078_v43 = vadd.f32 %v1046_v57, %v4184_v39  ;;  %v1214_v37 = vsel %vm839_vm0, %v1170_v47, %v1171_v15 }
 0x1ab   : > { %v1139_v35 = vadd.f32 %v1107_v34, %v4028_v38  ;;  %v1140_v51 = vadd.f32 %v1108_v52, %v1012_v24  ;;  %v1141_v56 = vadd.f32 %v1109_v16, %v4034_v12  ;;  %v1213_v19 = vsel %vm839_vm0, %v1171_v15, %v1172_v29 }
 0x1ac   : > { %v1215_v38 = vsel %vm839_vm0, %v1169_v30, %v1170_v47  ;;  %v1235_v34 = vsel %vm803_vm3, %v4003_v8, %v1214_v37  ;;  %v1266_v28 = vrot.slane %v777_v20, 1  ;;  %v1268_v52 = vrot.slane %v4166_v13, 1 }
 0x1ad   : > { %v1362_v12 = vmul.f32 0.75, %v777_v20  ;;  %v4245_v24 = vmul.f32 0.75, %v4166_v13  ;;  %v1394_v58 = vmul.f32 0.25, %v1215_v38  ;;  %v1395_v5 = vmul.f32 0.25, %v1235_v34 }
 0x1ae   : > { %v1396_v15 = vmul.f32 0.25, %v1213_v19  ;;  %v1309_v30 = vsel %vm936_vm1, %v1267_v22, %v1268_v52  ;;  %v1310_v47 = vsel %vm936_vm1, %v1266_v28, %v1267_v22  ;;  %v1311_v40 = vsel %vm936_vm1, %v1265_v54, %v1266_v28 }
 0x1af   : > { %v2582_v44 = vpack.c.bf16 %v1076_v49, %v1076_v49  ;;  %v1330_v36 = vsel %vm806_vm4, %v777_v20, %v1310_v47  ;;  %v1426_v61 = vadd.f32 %v1394_v58, %v1362_v12  ;;  %v1427_v53 = vadd.f32 %v1395_v5, %v4079_v32 }
 0x1b0   : > { %v1428_v57 = vadd.f32 %v1396_v15, %v4245_v24  ;;  %v1457_v8 = vmul.f32 0.25, %v1311_v40  ;;  %v1458_v22 = vmul.f32 0.25, %v1330_v36  ;;  %v1459_v7 = vmul.f32 0.25, %v1309_v30 }
 0x1b1   : > { %v2583_v16 = vpack.c.bf16 %v1077_v9, %v1077_v9  ;;  %1653 = vst.msk [vmem:[%s3092_s19 + $0x2c] sm:$0xf] %vm1641_vm2, %v2582_v44  ;;  %v2584_v54 = vpack.c.bf16 %v1078_v43, %v1078_v43  ;;  %v2613_v49 = vpack.c.bf16 %v1139_v35, %v1139_v35  ;;  %v2614_v20 = vpack.c.bf16 %v1140_v51, %v1140_v51 }
 0x1b2   : > { %v2615_v37 = vpack.c.bf16 %v1141_v56, %v1141_v56  ;;  %v1489_v19 = vadd.f32 %v1457_v8, %v4064_v50  ;;  %v1490_v38 = vadd.f32 %v1458_v22, %v1362_v12  ;;  %v1491_v34 = vadd.f32 %v1459_v7, %v4079_v32 }
 0x1b3   : > { %1654 = vst.msk [vmem:[%s3092_s19 + $0x30] sm:$0xf] %vm1641_vm2, %v2583_v16  ;;  %v2644_v28 = vpack.c.bf16 %v1426_v61, %v1426_v61  ;;  %1655 = vst.msk [vmem:[%s3092_s19 + $0x34] sm:$0xf] %vm1641_vm2, %v2584_v54  ;;  %v2645_v9 = vpack.c.bf16 %v1427_v53, %v1427_v53  ;;  %v2646_v50 = vpack.c.bf16 %v1428_v57, %v1428_v57 }
 0x1b4   : > { %2416 = vst.msk [vmem:[%s3092_s19 + $0xa8] sm:$0xf] %vm1641_vm2, %v2613_v49  ;;  %2417 = vst.msk [vmem:[%s3092_s19 + $0xac] sm:$0xf] %vm1641_vm2, %v2614_v20  ;;  %v763_v32 = vadd.f32 %v3728_v14, %v4174_v60  ;;  %v797_v43 = vadd.f32 %v4177_v23, %v3593_v41  ;;  %v2675_v35 = vpack.c.bf16 %v1489_v19, %v1489_v19 }
 0x1b5   : > { %2418 = vst.msk [vmem:[%s3092_s19 + $0xb0] sm:$0xf] %vm1641_vm2, %v2615_v37  ;;  %2479 = vst.msk [vmem:[%s3092_s19 + $0x124] sm:$0xf] %vm1641_vm2, %v2644_v28  ;;  %v2676_v51 = vpack.c.bf16 %v1490_v38, %v1490_v38  ;;  %v2677_v56 = vpack.c.bf16 %v1491_v34, %v1491_v34  ;;  %v799_v12 = vadd.f32 %v4155_v55, %v4174_v60  ;;  %v4845_v60 = vld [vmem:[#allocation4_spill] sm:$0xff]  ;;  %v4848_v37 = vrot.slane %v3139_v10, 7 }
 0x1b6   : > { %2480 = vst.msk [vmem:[%s3092_s19 + $0x128] sm:$0xf] %vm1641_vm2, %v2645_v9  ;;  %2481 = vst.msk [vmem:[%s3092_s19 + $0x12c] sm:$0xf] %vm1641_vm2, %v2646_v50  ;;  %v838_v58 = vrot.slane %v763_v32, 7  ;;  %v935_v5 = vrot.slane %v763_v32, 1 }
 0x1b7   : > { %v1032_v15 = vmul.f32 0.75, %v763_v32  ;;  %v1190_v30 = vrot.slane %v797_v43, 7  ;;  %2542 = vst.msk [vmem:[%s3092_s19 + $0x1a0] sm:$0xf] %vm1641_vm2, %v2675_v35  ;;  %2543 = vst.msk [vmem:[%s3092_s19 + $0x1a4] sm:$0xf] %vm1641_vm2, %v2676_v51 }
 0x1b8   : > { %2544 = vst.msk [vmem:[%s3092_s19 + $0x1a8] sm:$0xf] %vm1641_vm2, %v2677_v56  ;;  %v1192_v41 = vrot.slane %v799_v12, 7  ;;  %v1286_v14 = vrot.slane %v797_v43, 1  ;;  %v1288_v23 = vrot.slane %v799_v12, 1  ;;  %v1382_v47 = vmul.f32 0.75, %v797_v43 }
 0x1b9   : > { %v840_v55 = vsel %vm839_vm0, %v837_v4, %v838_v58  ;;  %v4846_v40 = vrot.slane %v4845_v60, 7  ;;  %v937_v36 = vsel %vm936_vm1, %v934_v33, %v935_v5  ;;  %v4847_v61 = vrot.slane %v4845_v60, 1  ;;  %v4849_v38 = vld [vmem:[#allocation9_spill] sm:$0xff] }
 0x1ba   : > { %v1064_v8 = vmul.f32 0.25, %v840_v55  ;;  %v1127_v22 = vmul.f32 0.25, %v937_v36  ;;  %v1193_v17 = vsel %vm839_vm0, %v1191_v3, %v1192_v41  ;;  %v1194_v33 = vsel %vm839_vm0, %v1190_v30, %v1191_v3 }
 0x1bb   : > { %v871_v44 = vsel %vm839_vm0, %v838_v58, %v4846_v40  ;;  %v968_v53 = vsel %vm936_vm1, %v935_v5, %v4847_v61  ;;  %v1195_v20 = vsel %vm839_vm0, %v1189_v42, %v1190_v30  ;;  %v1224_v19 = vsel %vm839_vm0, %v1192_v41, %v4848_v37 }
 0x1bc   : > { %v872_v57 = vsel %vm803_vm3, %v4845_v60, %v871_v44  ;;  %v1000_v4 = vsel %vm806_vm4, %v763_v32, %v968_v53  ;;  %v1096_v54 = vadd.f32 %v1064_v8, %v1032_v15  ;;  %v1159_v49 = vadd.f32 %v1127_v22, %v4096_v46 }
 0x1bd   : > { %v1033_v7 = vmul.f32 0.25, %v872_v57  ;;  %v1128_v16 = vmul.f32 0.25, %v1000_v4  ;;  %v1225_v3 = vsel %vm803_vm3, %v3139_v10, %v1224_v19  ;;  %v1255_v46 = vsel %vm803_vm3, %v4090_v11, %v1194_v33 }
 0x1be   : > { %v4850_v9 = vrot.slane %v4090_v11, 1  ;;  %v4852_v35 = vrot.slane %v4087_v21, 1  ;;  %v4853_v56 = vrot.slane %v3139_v10, 1  ;;  %v1384_v11 = vmul.f32 0.75, %v799_v12 }
 0x1bf   : > { %v1065_v34 = vadd.f32 %v1033_v7, %v4849_v38  ;;  %v1160_v28 = vadd.f32 %v1128_v16, %v1032_v15  ;;  %v1385_v30 = vmul.f32 0.25, %v1225_v3  ;;  %v1414_v41 = vmul.f32 0.25, %v1195_v20 }
 0x1c0   : > { %v1289_v42 = vsel %vm936_vm1, %v4850_v9, %v1288_v23  ;;  %v4851_v50 = vmov %v4850_v9  ;;  %v1291_v51 = vsel %vm936_vm1, %v4852_v35, %v1286_v14  ;;  %v1320_v58 = vsel %vm936_vm1, %v1288_v23, %v4853_v56 }
 0x1c1   : > { %v1290_v32 = vsel %vm936_vm1, %v1286_v14, %v4851_v50  ;;  %v1352_v15 = vsel %vm806_vm4, %v799_v12, %v1320_v58  ;;  %v1415_v55 = vmul.f32 0.25, %v1255_v46  ;;  %v1416_v60 = vmul.f32 0.25, %v1193_v17  ;;  %v4855_v46 = vld [vmem:[#allocation2_spill] sm:$0xff] }
 0x1c2   : > { %v1350_v5 = vsel %vm806_vm4, %v797_v43, %v1290_v32  ;;  %v1477_v21 = vmul.f32 0.25, %v1291_v51  ;;  %v1417_v40 = vadd.f32 %v1385_v30, %v3186_v62  ;;  %v1479_v10 = vmul.f32 0.25, %v1289_v42 }
 0x1c3   : > { %v1478_v14 = vmul.f32 0.25, %v1350_v5  ;;  %v1480_v44 = vmul.f32 0.25, %v1352_v15  ;;  %v1446_v36 = vadd.f32 %v1414_v41, %v1382_v47  ;;  %v1447_v23 = vadd.f32 %v1415_v55, %v4141_v26 }
 0x1c4   : > { %v1448_v43 = vadd.f32 %v1416_v60, %v1384_v11  ;;  %v1509_v61 = vadd.f32 %v1477_v21, %v4138_v0  ;;  %v1511_v53 = vadd.f32 %v1479_v10, %v4141_v26  ;;  %v2571_v4 = vpack.c.bf16 %v1065_v34, %v1065_v34  ;;  %v4854_v34 = vld [vmem:[#allocation3_spill] sm:$0xff] }
 0x1c5   : > { %v1510_v12 = vadd.f32 %v1478_v14, %v1382_v47  ;;  %v1512_v57 = vadd.f32 %v1480_v44, %v1384_v11  ;;  %v2602_v62 = vpack.c.bf16 %v1096_v54, %v1096_v54  ;;  %v2633_v8 = vpack.c.bf16 %v1159_v49, %v1159_v49 }
 0x1c6   : > { %v2634_v22 = vpack.c.bf16 %v1160_v28, %v1160_v28  ;;  %v2635_v7 = vpack.c.bf16 %v1417_v40, %v1417_v40  ;;  %1642 = vst.msk [vmem:[%s3092_s19] sm:$0xf] %vm1641_vm2, %v2571_v4  ;;  %v2664_v16 = vpack.c.bf16 %v1446_v36, %v1446_v36  ;;  %v2665_v17 = vpack.c.bf16 %v1447_v23, %v1447_v23 }
 0x1c7   : > { %v2666_v0 = vpack.c.bf16 %v1448_v43, %v1448_v43  ;;  %v2695_v33 = vpack.c.bf16 %v1509_v61, %v1509_v61  ;;  %1673 = vst.msk [vmem:[%s3092_s19 + $0x7c] sm:$0xf] %vm1641_vm2, %v2602_v62  ;;  %2436 = vst.msk [vmem:[%s3092_s19 + $0xf8] sm:$0xf] %vm1641_vm2, %v2633_v8  ;;  %v2696_v26 = vpack.c.bf16 %v1510_v12, %v1510_v12  ;;  %v684_v49 = vmul.f32 0.75, %v3376_v18 }
 0x1c8   : > { %2437 = vst.msk [vmem:[%s3092_s19 + $0xfc] sm:$0xf] %vm1641_vm2, %v2634_v22  ;;  %2470 = vst.msk [vmem:[%s3092_s19 + $0x100] sm:$0xf] %vm1641_vm2, %v2635_v7  ;;  %v2697_v47 = vpack.c.bf16 %v1511_v53, %v1511_v53  ;;  %v2698_v54 = vpack.c.bf16 %v1512_v57, %v1512_v57  ;;  %v718_v20 = vmul.f32 0.25, %v3376_v18  ;;  %v682_v37 = vmul.f32 0.75, %v3434_v6 }
 0x1c9   : > { %2499 = vst.msk [vmem:[%s3092_s19 + $0x174] sm:$0xf] %vm1641_vm2, %v2664_v16  ;;  %2500 = vst.msk [vmem:[%s3092_s19 + $0x178] sm:$0xf] %vm1641_vm2, %v2665_v17  ;;  %v716_v19 = vmul.f32 0.25, %v3434_v6  ;;  %v4389_v38 = vmul.f32 0.75, %v3490_v63  ;;  %v4398_v28 = vadd.f32 %v4854_v34, %v684_v49 }
 0x1ca   : > { %2501 = vst.msk [vmem:[%s3092_s19 + $0x17c] sm:$0xf] %vm1641_vm2, %v2666_v0  ;;  %2562 = vst.msk [vmem:[%s3092_s19 + $0x1f0] sm:$0xf] %vm1641_vm2, %v2695_v33  ;;  %v4401_v3 = vmul.f32 0.25, %v3490_v63  ;;  %v4404_v18 = vmul.f32 0.75, %v3536_v48  ;;  %v4410_v9 = vadd.f32 %v718_v20, %v4855_v46  ;;  %v4413_v42 = vadd.f32 %v3892_v25, %v682_v37 }
 0x1cb   : > { %2563 = vst.msk [vmem:[%s3092_s19 + $0x1f4] sm:$0xf] %vm1641_vm2, %v2696_v26  ;;  %2564 = vst.msk [vmem:[%s3092_s19 + $0x1f8] sm:$0xf] %vm1641_vm2, %v2697_v47  ;;  %v4407_v6 = vmul.f32 0.25, %v3536_v48  ;;  %v4415_v50 = vadd.f32 %v716_v19, %v684_v49  ;;  %v4418_v32 = vadd.f32 %v716_v19, %v3883_v2  ;;  %v1177_v63 = vrot.slane %v4398_v28, 7 }
 0x1cc   : > { %2565 = vst.msk [vmem:[%s3092_s19 + $0x1fc] sm:$0xf] %vm1641_vm2, %v2698_v54  ;;  %v1273_v35 = vrot.slane %v4398_v28, 1  ;;  %v4423_v51 = vmul.f32 0.75, %v4398_v28  ;;  %v4425_v48 = vadd.f32 %v718_v20, %v682_v37  ;;  %v825_v56 = vrot.slane %v4410_v9, 7  ;;  %v4858_v7 = vld [vmem:[#allocation7_spill] sm:$0xff] }
 0x1cd   : > { %v922_v58 = vrot.slane %v4410_v9, 1  ;;  %v4430_v25 = vmul.f32 0.75, %v4410_v9  ;;  %v821_v5 = vrot.slane %v4413_v42, 7  ;;  %v823_v2 = vrot.slane %v4415_v50, 7  ;;  %v4859_v33 = vld [vmem:[#allocation8_spill] sm:$0xff]  ;;  %v4860_v46 = vld [vmem:[#allocation5_spill] sm:$0xff] }
 0x1ce   : > { %v918_v15 = vrot.slane %v4413_v42, 1  ;;  %v920_v11 = vrot.slane %v4415_v50, 1  ;;  %v4437_v30 = vmul.f32 0.75, %v4413_v42  ;;  %v4856_v41 = vrot.slane %v4162_v1, 7 }
 0x1cf   : > { %v4446_v60 = vmul.f32 0.75, %v4415_v50  ;;  %v1173_v21 = vrot.slane %v4418_v32, 7  ;;  %v1175_v40 = vrot.slane %v4425_v48, 7  ;;  %v4857_v10 = vrot.slane %v4162_v1, 1 }
 0x1d0   : > { %v857_v55 = vsel %vm839_vm0, %v4856_v41, %v821_v5  ;;  %v1269_v36 = vrot.slane %v4418_v32, 1  ;;  %v1271_v23 = vrot.slane %v4425_v48, 1  ;;  %v4471_v53 = vmul.f32 0.75, %v4418_v32 }
 0x1d1   : > { %v886_v14 = vsel %vm803_vm3, %v4413_v42, %v857_v55  ;;  %v954_v44 = vsel %vm936_vm1, %v4857_v10, %v918_v15  ;;  %v1212_v12 = vsel %vm839_vm0, %v1172_v29, %v1173_v21  ;;  %v4483_v62 = vmul.f32 0.75, %v4425_v48 }
 0x1d2   : > { %v982_v43 = vsel %vm806_vm4, %v4162_v1, %v954_v44  ;;  %v1047_v61 = vmul.f32 0.25, %v886_v14  ;;  %v1237_v4 = vsel %vm803_vm3, %v4418_v32, %v1212_v12  ;;  %v1308_v1 = vsel %vm936_vm1, %v1268_v52, %v1269_v36 }
 0x1d3   : > { %v1110_v57 = vmul.f32 0.25, %v982_v43  ;;  %v1332_v8 = vsel %vm806_vm4, %v4166_v13, %v1308_v1  ;;  %v1397_v22 = vmul.f32 0.25, %v1237_v4  ;;  %v751_v16 = vadd.f32 %v4401_v3, %v4858_v7 }
 0x1d4   : > { %v1079_v29 = vadd.f32 %v1047_v61, %v4437_v30  ;;  %v1460_v0 = vmul.f32 0.25, %v1332_v8  ;;  %v785_v52 = vadd.f32 %v4859_v33, %v4389_v38  ;;  %v4496_v26 = vadd.f32 %v4023_v31, %v4404_v18  ;;  %v4865_v33 = vld [vmem:[#allocation10_spill] sm:$0xff] }
 0x1d5   : > { %v1142_v17 = vadd.f32 %v1110_v57, %v4184_v39  ;;  %v1429_v47 = vadd.f32 %v1397_v22, %v4471_v53  ;;  %v826_v49 = vrot.slane %v751_v16, 7  ;;  %v923_v13 = vrot.slane %v751_v16, 1 }
 0x1d6   : > { %v2585_v54 = vpack.c.bf16 %v1079_v29, %v1079_v29  ;;  %v1492_v20 = vadd.f32 %v1460_v0, %v4245_v24  ;;  %v1020_v19 = vmul.f32 0.75, %v751_v16  ;;  %v1178_v39 = vrot.slane %v785_v52, 7  ;;  %v4863_v29 = vld [vmem:[#allocation6_spill] sm:$0xff] }
 0x1d7   : > { %v2616_v37 = vpack.c.bf16 %v1142_v17, %v1142_v17  ;;  %v2647_v34 = vpack.c.bf16 %v1429_v47, %v1429_v47  ;;  %v4861_v41 = vrot.slane %v4860_v46, 7  ;;  %v852_v55 = vsel %vm839_vm0, %v825_v56, %v826_v49 }
 0x1d8   : > { %1656 = vst.msk [vmem:[%s3092_s19 + $0x38] sm:$0xf] %vm1641_vm2, %v2585_v54  ;;  %v4862_v14 = vrot.slane %v4860_v46, 1  ;;  %v2678_v10 = vpack.c.bf16 %v1492_v20, %v1492_v20  ;;  %v949_v43 = vsel %vm936_vm1, %v922_v58, %v923_v13  ;;  %v1052_v12 = vmul.f32 0.25, %v852_v55 }
 0x1d9   : > { %v851_v31 = vsel %vm839_vm0, %v826_v49, %v4861_v41  ;;  %2419 = vst.msk [vmem:[%s3092_s19 + $0xb4] sm:$0xf] %vm1641_vm2, %v2616_v37  ;;  %2482 = vst.msk [vmem:[%s3092_s19 + $0x130] sm:$0xf] %vm1641_vm2, %v2647_v34  ;;  %v1115_v4 = vmul.f32 0.25, %v949_v43  ;;  %v4864_v8 = vrot.slane %v4863_v29, 7  ;;  %v1207_v7 = vsel %vm839_vm0, %v1177_v63, %v1178_v39 }
 0x1da   : > { %v948_v24 = vsel %vm936_vm1, %v923_v13, %v4862_v14  ;;  %v892_v44 = vsel %vm803_vm3, %v4860_v46, %v851_v31  ;;  %2545 = vst.msk [vmem:[%s3092_s19 + $0x1ac] sm:$0xf] %vm1641_vm2, %v2678_v10  ;;  %v1274_v17 = vrot.slane %v785_v52, 1  ;;  %v1084_v0 = vadd.f32 %v1052_v12, %v1020_v19 }
 0x1db   : > { %v988_v61 = vsel %vm806_vm4, %v751_v16, %v948_v24  ;;  %v1053_v57 = vmul.f32 0.25, %v892_v44  ;;  %v1206_v22 = vsel %vm839_vm0, %v1178_v39, %v4864_v8  ;;  %v1370_v16 = vmul.f32 0.75, %v785_v52  ;;  %v4867_v44 = vld [vmem:[#allocation11_spill] sm:$0xff] }
 0x1dc   : > { %v1116_v1 = vmul.f32 0.25, %v988_v61  ;;  %v1147_v54 = vadd.f32 %v1115_v4, %v4430_v25  ;;  %v1243_v13 = vsel %vm803_vm3, %v4863_v29, %v1206_v22  ;;  %v4866_v20 = vrot.slane %v4863_v29, 1 }
 0x1dd   : > { %v1085_v47 = vadd.f32 %v1053_v57, %v4865_v33  ;;  %v1303_v39 = vsel %vm936_vm1, %v1273_v35, %v1274_v17  ;;  %v1402_v34 = vmul.f32 0.25, %v1207_v7  ;;  %v1403_v46 = vmul.f32 0.25, %v1243_v13 }
 0x1de   : > { %v1148_v49 = vadd.f32 %v1116_v1, %v1020_v19  ;;  %v1302_v37 = vsel %vm936_vm1, %v1274_v17, %v4866_v20  ;;  %v1465_v41 = vmul.f32 0.25, %v1303_v39  ;;  %v2590_v31 = vpack.c.bf16 %v1084_v0, %v1084_v0 }
 0x1df   : > { %v1338_v19 = vsel %vm806_vm4, %v785_v52, %v1302_v37  ;;  %v1434_v55 = vadd.f32 %v1402_v34, %v1370_v16  ;;  %v2591_v24 = vpack.c.bf16 %v1085_v47, %v1085_v47  ;;  %v2621_v10 = vpack.c.bf16 %v1147_v54, %v1147_v54 }
 0x1e0   : > { %v1466_v14 = vmul.f32 0.25, %v1338_v19  ;;  %v1435_v43 = vadd.f32 %v1403_v46, %v4867_v44  ;;  %v1497_v61 = vadd.f32 %v1465_v41, %v4423_v51  ;;  %1661 = vst.msk [vmem:[%s3092_s19 + $0x4c] sm:$0xf] %vm1641_vm2, %v2590_v31  ;;  %v2622_v12 = vpack.c.bf16 %v1148_v49, %v1148_v49 }
 0x1e1   : > { %v749_v57 = vadd.f32 %v4407_v6, %v4389_v38  ;;  %1662 = vst.msk [vmem:[%s3092_s19 + $0x50] sm:$0xf] %vm1641_vm2, %v2591_v24  ;;  %2424 = vst.msk [vmem:[%s3092_s19 + $0xc8] sm:$0xf] %vm1641_vm2, %v2621_v10  ;;  %v2652_v4 = vpack.c.bf16 %v1434_v55, %v1434_v55  ;;  %v4564_v1 = vadd.f32 %v4407_v6, %v4020_v59  ;;  %v822_v22 = vrot.slane %v4496_v26, 7 }
 0x1e2   : > { %v1498_v52 = vadd.f32 %v1466_v14, %v1370_v16  ;;  %v783_v29 = vadd.f32 %v4401_v3, %v4404_v18  ;;  %2425 = vst.msk [vmem:[%s3092_s19 + $0xcc] sm:$0xf] %vm1641_vm2, %v2622_v12  ;;  %v2653_v8 = vpack.c.bf16 %v1435_v43, %v1435_v43  ;;  %v2683_v38 = vpack.c.bf16 %v1497_v61, %v1497_v61 }
 0x1e3   : > { %v824_v7 = vrot.slane %v749_v57, 7  ;;  %2487 = vst.msk [vmem:[%s3092_s19 + $0x144] sm:$0xf] %vm1641_vm2, %v2652_v4  ;;  %v919_v16 = vrot.slane %v4496_v26, 1  ;;  %v921_v0 = vrot.slane %v749_v57, 1  ;;  %v1016_v59 = vmul.f32 0.75, %v4496_v26 }
 0x1e4   : > { %v2684_v17 = vpack.c.bf16 %v1498_v52, %v1498_v52  ;;  %2488 = vst.msk [vmem:[%s3092_s19 + $0x148] sm:$0xf] %vm1641_vm2, %v2653_v8  ;;  %2550 = vst.msk [vmem:[%s3092_s19 + $0x1c0] sm:$0xf] %vm1641_vm2, %v2683_v38  ;;  %v855_v6 = vsel %vm839_vm0, %v822_v22, %v823_v2  ;;  %v856_v33 = vsel %vm839_vm0, %v821_v5, %v822_v22  ;;  %v1018_v13 = vmul.f32 0.75, %v749_v57 }
 0x1e5   : > { %v853_v3 = vsel %vm839_vm0, %v824_v7, %v825_v56  ;;  %v854_v18 = vsel %vm839_vm0, %v823_v2, %v824_v7  ;;  %v888_v56 = vsel %vm803_vm3, %v4415_v50, %v855_v6  ;;  %v950_v2 = vsel %vm936_vm1, %v921_v0, %v922_v58 }
 0x1e6   : > { %2551 = vst.msk [vmem:[%s3092_s19 + $0x1c4] sm:$0xf] %vm1641_vm2, %v2684_v17  ;;  %v890_v47 = vsel %vm803_vm3, %v4410_v9, %v853_v3  ;;  %v951_v5 = vsel %vm936_vm1, %v920_v11, %v921_v0  ;;  %v952_v54 = vsel %vm936_vm1, %v919_v16, %v920_v11  ;;  %v953_v49 = vsel %vm936_vm1, %v918_v15, %v919_v16 }
 0x1e7   : > { %v986_v9 = vsel %vm806_vm4, %v749_v57, %v950_v2  ;;  %v984_v58 = vsel %vm806_vm4, %v4496_v26, %v952_v54  ;;  %v1048_v20 = vmul.f32 0.25, %v856_v33  ;;  %v1049_v37 = vmul.f32 0.25, %v888_v56 }
 0x1e8   : > { %v1050_v39 = vmul.f32 0.25, %v854_v18  ;;  %v1051_v50 = vmul.f32 0.25, %v890_v47  ;;  %v1111_v34 = vmul.f32 0.25, %v953_v49  ;;  %v1112_v19 = vmul.f32 0.25, %v984_v58 }
 0x1e9   : > { %v1113_v11 = vmul.f32 0.25, %v951_v5  ;;  %v1080_v46 = vadd.f32 %v1048_v20, %v1016_v59  ;;  %v1081_v42 = vadd.f32 %v1049_v37, %v4446_v60  ;;  %v1114_v15 = vmul.f32 0.25, %v986_v9 }
 0x1ea   : > { %v1082_v41 = vadd.f32 %v1050_v39, %v1018_v13  ;;  %v1083_v31 = vadd.f32 %v1051_v50, %v4430_v25  ;;  %v1143_v55 = vadd.f32 %v1111_v34, %v4437_v30  ;;  %v1144_v14 = vadd.f32 %v1112_v19, %v1016_v59 }
 0x1eb   : > { %v1145_v24 = vadd.f32 %v1113_v11, %v4446_v60  ;;  %v1146_v26 = vadd.f32 %v1114_v15, %v1018_v13  ;;  %v1174_v10 = vrot.slane %v4564_v1, 7  ;;  %v1176_v44 = vrot.slane %v783_v29, 7 }
 0x1ec   : > { %v1270_v43 = vrot.slane %v4564_v1, 1  ;;  %v1272_v61 = vrot.slane %v783_v29, 1  ;;  %v1366_v12 = vmul.f32 0.75, %v4564_v1  ;;  %v1368_v57 = vmul.f32 0.75, %v783_v29 }
 0x1ed   : > { %v2586_v52 = vpack.c.bf16 %v1080_v46, %v1080_v46  ;;  %v1208_v25 = vsel %vm839_vm0, %v1176_v44, %v1177_v63  ;;  %v1209_v30 = vsel %vm839_vm0, %v1175_v40, %v1176_v44  ;;  %v1210_v60 = vsel %vm839_vm0, %v1174_v10, %v1175_v40 }
 0x1ee   : > { %v1211_v4 = vsel %vm839_vm0, %v1173_v21, %v1174_v10  ;;  %v1239_v8 = vsel %vm803_vm3, %v4425_v48, %v1210_v60  ;;  %v1241_v63 = vsel %vm803_vm3, %v4398_v28, %v1208_v25  ;;  %v1304_v38 = vsel %vm936_vm1, %v1272_v61, %v1273_v35 }
 0x1ef   : > { %v1305_v40 = vsel %vm936_vm1, %v1271_v23, %v1272_v61  ;;  %1657 = vst.msk [vmem:[%s3092_s19 + $0x3c] sm:$0xf] %vm1641_vm2, %v2586_v52  ;;  %v1306_v21 = vsel %vm936_vm1, %v1270_v43, %v1271_v23  ;;  %v1307_v28 = vsel %vm936_vm1, %v1269_v36, %v1270_v43  ;;  %v1336_v35 = vsel %vm806_vm4, %v783_v29, %v1304_v38 }
 0x1f0   : > { %v1398_v22 = vmul.f32 0.25, %v1211_v4  ;;  %v1334_v7 = vsel %vm806_vm4, %v4564_v1, %v1306_v21  ;;  %v1399_v17 = vmul.f32 0.25, %v1239_v8  ;;  %v1400_v16 = vmul.f32 0.25, %v1209_v30 }
 0x1f1   : > { %v1401_v0 = vmul.f32 0.25, %v1241_v63  ;;  %v1461_v59 = vmul.f32 0.25, %v1307_v28  ;;  %v1462_v23 = vmul.f32 0.25, %v1334_v7  ;;  %v1463_v3 = vmul.f32 0.25, %v1305_v40 }
 0x1f2   : > { %v1430_v48 = vadd.f32 %v1398_v22, %v1366_v12  ;;  %v1431_v32 = vadd.f32 %v1399_v17, %v4483_v62  ;;  %v1432_v27 = vadd.f32 %v1400_v16, %v1368_v57  ;;  %v1464_v29 = vmul.f32 0.25, %v1336_v35 }
 0x1f3   : > { %v1433_v36 = vadd.f32 %v1401_v0, %v4423_v51  ;;  %v1493_v45 = vadd.f32 %v1461_v59, %v4471_v53  ;;  %v1494_v1 = vadd.f32 %v1462_v23, %v1366_v12  ;;  %v1495_v18 = vadd.f32 %v1463_v3, %v4483_v62 }
 0x1f4   : > { %v2587_v6 = vpack.c.bf16 %v1081_v42, %v1081_v42  ;;  %v1496_v33 = vadd.f32 %v1464_v29, %v1368_v57  ;;  %v2588_v56 = vpack.c.bf16 %v1082_v41, %v1082_v41  ;;  %v2589_v47 = vpack.c.bf16 %v1083_v31, %v1083_v31 }
 0x1f5   : > { %v2617_v2 = vpack.c.bf16 %v1143_v55, %v1143_v55  ;;  %v2618_v51 = vpack.c.bf16 %v1144_v14, %v1144_v14  ;;  %v2619_v5 = vpack.c.bf16 %v1145_v24, %v1145_v24  ;;  %v2620_v54 = vpack.c.bf16 %v1146_v26, %v1146_v26 }
 0x1f6   : > { %1658 = vst.msk [vmem:[%s3092_s19 + $0x40] sm:$0xf] %vm1641_vm2, %v2587_v6  ;;  %v2648_v49 = vpack.c.bf16 %v1430_v48, %v1430_v48  ;;  %1659 = vst.msk [vmem:[%s3092_s19 + $0x44] sm:$0xf] %vm1641_vm2, %v2588_v56  ;;  %v2649_v53 = vpack.c.bf16 %v1431_v32, %v1431_v32  ;;  %v2650_v62 = vpack.c.bf16 %v1432_v27, %v1432_v27 }
 0x1f7   : > { %1660 = vst.msk [vmem:[%s3092_s19 + $0x48] sm:$0xf] %vm1641_vm2, %v2589_v47  ;;  %2420 = vst.msk [vmem:[%s3092_s19 + $0xb8] sm:$0xf] %vm1641_vm2, %v2617_v2  ;;  %v2651_v9 = vpack.c.bf16 %v1433_v36, %v1433_v36  ;;  %v2679_v13 = vpack.c.bf16 %v1493_v45, %v1493_v45  ;;  %v2680_v58 = vpack.c.bf16 %v1494_v1, %v1494_v1 }
 0x1f8   : > { %2421 = vst.msk [vmem:[%s3092_s19 + $0xbc] sm:$0xf] %vm1641_vm2, %v2618_v51  ;;  %2422 = vst.msk [vmem:[%s3092_s19 + $0xc0] sm:$0xf] %vm1641_vm2, %v2619_v5  ;;  %v2681_v20 = vpack.c.bf16 %v1495_v18, %v1495_v18  ;;  %v2682_v37 = vpack.c.bf16 %v1496_v33, %v1496_v33 }
 0x1f9   : > { %2423 = vst.msk [vmem:[%s3092_s19 + $0xc4] sm:$0xf] %vm1641_vm2, %v2620_v54  ;;  %2483 = vst.msk [vmem:[%s3092_s19 + $0x134] sm:$0xf] %vm1641_vm2, %v2648_v49 }
 0x1fa   : > { %2484 = vst.msk [vmem:[%s3092_s19 + $0x138] sm:$0xf] %vm1641_vm2, %v2649_v53  ;;  %2485 = vst.msk [vmem:[%s3092_s19 + $0x13c] sm:$0xf] %vm1641_vm2, %v2650_v62 }
 0x1fb   : > { %2486 = vst.msk [vmem:[%s3092_s19 + $0x140] sm:$0xf] %vm1641_vm2, %v2651_v9  ;;  %2546 = vst.msk [vmem:[%s3092_s19 + $0x1b0] sm:$0xf] %vm1641_vm2, %v2679_v13 }
 0x1fc   : > { %2547 = vst.msk [vmem:[%s3092_s19 + $0x1b4] sm:$0xf] %vm1641_vm2, %v2680_v58  ;;  %2548 = vst.msk [vmem:[%s3092_s19 + $0x1b8] sm:$0xf] %vm1641_vm2, %v2681_v20 }
 0x1fd   : > { %2549 = vst.msk [vmem:[%s3092_s19 + $0x1bc] sm:$0xf] %vm1641_vm2, %v2682_v37 }
 0x1fe PF: > { %s13_s14 = sadd.s32 1, %s2865_s14   ;;  %s4868_s12 = smov %s2861_s13 }
 0x1ff   : > { %p10_p5 = scmp.ge.s32.totalorder %s13_s14, 4   ;;  %s4869_s13 = smov %s4871_s15 }
 0x201   :  { %12 = sbr.rel (!%p10_p5) target bundleno = 2 (0x2), region = 72 }

</bundles_post_ra>
